<compile_context>
chip_gen: v7x
topology: tpu7x:2x2x1
jax: 0.10.0
libtpu: 0.0.40
codegen_flags: <defaults>
</compile_context>

<pallas_src>
import numpy as np

import jax
import jax.numpy as jnp
from jax.experimental import pallas as pl
from jax.experimental.pallas import tpu as pltpu


_BN_EPS = 1e-5


# -----------------------------------------------------------------------------
# The fused Pallas kernel
# -----------------------------------------------------------------------------
def _vae_encoder_kernel(p1_ref, w1_ref, g2_ref, w2_ref, g3_ref, w3_ref,
                        wh_ref, sb_ref, eps_ref, out_ref):
    f32, bf16 = jnp.float32, jnp.bfloat16

    # Static sizes (trace-time Python ints).
    c1 = w1_ref.shape[1]             # conv1 out channels (32)
    c2 = w2_ref.shape[1]             # conv2 out channels (32)
    c3 = w3_ref.shape[1]             # conv3 out channels (64)
    kk2 = w2_ref.shape[0] // c1      # conv2 k*k (16)
    kk3 = w3_ref.shape[0] // c2      # conv3 k*k (9)
    r2 = g2_ref.shape[0] // kk2      # conv2 output rows = N*H2*W2 (32)
    r3 = g3_ref.shape[0] // kk3      # conv3 output rows = H3*W3*N, pos-major (8)
    npos = wh_ref.shape[0] // c3     # H3*W3 (4)
    nb, latent = eps_ref.shape       # (2, 32)

    sb = sb_ref[...]                 # (8,128) f32 slab: g1,b1,g2,b2,g3,b3,fc_bias

    def bn_relu(acc, gamma, beta):
        # BatchNorm2d with per-batch statistics over rows (= N*H*W), biased variance.
        mean = jnp.mean(acc, axis=0, keepdims=True)
        xc = acc - mean
        var = jnp.mean(xc * xc, axis=0, keepdims=True)
        y = xc * jax.lax.rsqrt(var + _BN_EPS) * gamma + beta
        return jnp.maximum(y, 0.0).astype(bf16)

    # ---- conv1: wrapper-side im2col patches (N*H1*W1, k*k*C_in) @ W1 ---------------
    a1 = bn_relu(jnp.dot(p1_ref[...], w1_ref[...], preferred_element_type=f32),
                 sb[0:1, :c1], sb[1:2, :c1])                       # (128, 32) bf16

    # ---- conv2: ONE fused gather matmul (all 16 offsets), rows ordered (dd, r) -----
    q2 = jnp.dot(g2_ref[...], a1, preferred_element_type=f32).astype(bf16)   # (512, 32)
    acc2 = jnp.dot(q2[0:r2, :], w2_ref[0:c1, :], preferred_element_type=f32)
    for dd in range(1, kk2):
        acc2 = acc2 + jnp.dot(q2[dd * r2:(dd + 1) * r2, :],
                              w2_ref[dd * c1:(dd + 1) * c1, :],
                              preferred_element_type=f32)
    a2 = bn_relu(acc2, sb[2:3, :c2], sb[3:4, :c2])                 # (32, 32) bf16

    # ---- conv3 (output rows position-major so the head slices are contiguous) ------
    q3 = jnp.dot(g3_ref[...], a2, preferred_element_type=f32).astype(bf16)   # (72, 32)
    acc3 = jnp.dot(q3[0:r3, :], w3_ref[0:c2, :], preferred_element_type=f32)
    for dd in range(1, kk3):
        acc3 = acc3 + jnp.dot(q3[dd * r3:(dd + 1) * r3, :],
                              w3_ref[dd * c2:(dd + 1) * c2, :],
                              preferred_element_type=f32)
    a3 = bn_relu(acc3, sb[4:5, :c3], sb[5:6, :c3])                 # (8, 64) bf16

    # ---- head: Flatten (PyTorch NCHW order folded into wh) + fc_mu||fc_var + reparam
    head = jnp.dot(a3[0:nb, :], wh_ref[0:c3, :], preferred_element_type=f32)
    for pos in range(1, npos):
        head = head + jnp.dot(a3[pos * nb:(pos + 1) * nb, :],
                              wh_ref[pos * c3:(pos + 1) * c3, :],
                              preferred_element_type=f32)
    head = head + sb[6:7, :2 * latent]                             # (N, 2*latent)

    mu = head[:, :latent]
    log_var = head[:, latent:]
    out_ref[:, 0:latent] = eps_ref[...] * jnp.exp(0.5 * log_var) + mu
    out_ref[:, latent:3 * latent] = head                           # [mu | log_var]


_VMEM = pl.BlockSpec(memory_space=pltpu.MemorySpace.VMEM)


def vae_encoder_pallas(kp, patches1, eps):
    n, latent = eps.shape
    out = pl.pallas_call(
        _vae_encoder_kernel,
        out_shape=jax.ShapeDtypeStruct((n, 3 * latent), jnp.float32),
        in_specs=[_VMEM] * 9,
        out_specs=_VMEM,
    )(patches1, kp["w1"], kp["g2"], kp["w2"], kp["g3"], kp["w3"],
      kp["wh"], kp["slab"], eps)
    return out[:, :latent], out[:, latent:2 * latent], out[:, 2 * latent:]


# -----------------------------------------------------------------------------
# Wrapper glue: conv1 im2col (on the raw input only) + parameter packing
# -----------------------------------------------------------------------------
def _conv_out_size(size, k, stride, pad):
    return (size + 2 * pad - k) // stride + 1


def _im2col_nhwc(x_nhwc, k, stride, pad):
    """(N,H,W,C) -> (N*Ho*Wo, k*k*C) patches, column order (di, dj, c)."""
    n, h, w, c = x_nhwc.shape
    ho, wo = _conv_out_size(h, k, stride, pad), _conv_out_size(w, k, stride, pad)
    xp = jnp.pad(x_nhwc, ((0, 0), (pad, pad), (pad, pad), (0, 0)))
    cols = [xp[:, di:di + stride * ho:stride, dj:dj + stride * wo:stride, :]
            for di in range(k) for dj in range(k)]
    patches = jnp.stack(cols, axis=3)                 # (N, Ho, Wo, k*k, C)
    return patches.reshape(n * ho * wo, k * k * c)


def vae_encoder_forward(kp, x_nchw, eps):
    """Matches VAEEncoder.forward: returns [z, mu, log_var]."""
    x_nhwc = jnp.transpose(x_nchw, (0, 2, 3, 1))      # single layout permute (8 KiB input)
    patches1 = _im2col_nhwc(x_nhwc, k=4, stride=2, pad=1).astype(jnp.bfloat16)
    z, mu, log_var = vae_encoder_pallas(kp, patches1, eps)
    return [z, mu, log_var]


def _build_gather_matrix(n, h_in, w_in, h_out, w_out, k, stride, pad, out_order):
    """Stacked one-hot gather (bf16), rows ordered (dd, r_out), dd = di*k + dj.

    G[dd*R_out + r, r_in] = 1 iff input pixel for output pixel r at window offset dd is
    r_in (all-zero row == spatial zero-padding). Input rows are n-major (b, hi, wj);
    output rows are n-major (b, i, j) or pos-major (i*w_out+j, b)."""
    r_out_n, r_in_n = n * h_out * w_out, n * h_in * w_in
    g = np.zeros((k * k * r_out_n, r_in_n), dtype=np.float32)
    for dd in range(k * k):
        di, dj = divmod(dd, k)
        for r in range(r_out_n):
            if out_order == "n_major":
                b, rem = divmod(r, h_out * w_out)
                i, j = divmod(rem, w_out)
            else:  # "pos_major"
                pos, b = divmod(r, n)
                i, j = divmod(pos, w_out)
            hi, wj = stride * i + di - pad, stride * j + dj - pad
            if 0 <= hi < h_in and 0 <= wj < w_in:
                g[dd * r_out_n + r, (b * h_in + hi) * w_in + wj] = 1.0
    return jnp.asarray(g, dtype=jnp.bfloat16)


def _conv_w_flat(wt):
    """(C_out, C_in, k, k) -> (k*k*C_in, C_out) bf16, rows ordered (di, dj, c_in)."""
    c_out, c_in, k, _ = wt.shape
    return jnp.transpose(wt, (2, 3, 1, 0)).reshape(k * k * c_in, c_out).astype(jnp.bfloat16)


def _pad_row(v, width=128):
    v = jnp.asarray(v, jnp.float32).reshape(-1)
    return jnp.pad(v, (0, width - v.shape[0]))


def init_params(key, num_channels, latent_dim, encoder_output_size):
    """PyTorch-layout parameters (Conv2d OIHW, Linear (out,in))."""
    ks = jax.random.split(key, 5)

    def conv_p(k, c_in, c_out, ksize):
        kw, kb, kg, kbe = jax.random.split(k, 4)
        return {
            "w": 0.05 * jax.random.normal(kw, (c_out, c_in, ksize, ksize), jnp.float32),
            # NOTE: the conv bias is mathematically cancelled by train-mode BatchNorm;
            # it is kept here (and used by the reference) only to demonstrate that.
            "b": 0.05 * jax.random.normal(kb, (c_out,), jnp.float32),
            "gamma": 1.0 + 0.1 * jax.random.normal(kg, (c_out,), jnp.float32),
            "beta": 0.1 * jax.random.normal(kbe, (c_out,), jnp.float32),
        }

    def lin_p(k, f_in, f_out):
        kw, kb = jax.random.split(k)
        return {"w": 0.05 * jax.random.normal(kw, (f_out, f_in), jnp.float32),
                "b": 0.05 * jax.random.normal(kb, (f_out,), jnp.float32)}

    return {
        "conv1": conv_p(ks[0], num_channels, 32, 4),
        "conv2": conv_p(ks[1], 32, 32, 4),
        "conv3": conv_p(ks[2], 32, 64, 3),
        "fc_mu": lin_p(ks[3], encoder_output_size, latent_dim),
        "fc_var": lin_p(ks[4], encoder_output_size, latent_dim),
    }


def pack_params_for_kernel(params, batch, height, width, latent_dim):
    bf16 = jnp.bfloat16
    h1, w1 = _conv_out_size(height, 4, 2, 1), _conv_out_size(width, 4, 2, 1)
    h2, w2 = _conv_out_size(h1, 4, 2, 1), _conv_out_size(w1, 4, 2, 1)
    h3, w3 = _conv_out_size(h2, 3, 2, 1), _conv_out_size(w2, 3, 2, 1)
    c3 = params["conv3"]["w"].shape[0]

    # Fused fc_mu || fc_var weight, rows re-ordered from PyTorch's NCHW-Flatten index
    # (f = c*H3*W3 + pos) to the kernel's (pos, c) slice order.
    wcat = jnp.concatenate([params["fc_mu"]["w"].T, params["fc_var"]["w"].T], axis=1)
    assert wcat.shape[0] == c3 * h3 * w3, "encoder_output_size mismatch"
    wh = wcat.reshape(c3, h3 * w3, 2 * latent_dim).transpose(1, 0, 2)
    wh = wh.reshape(h3 * w3 * c3, 2 * latent_dim).astype(bf16)

    slab = jnp.stack([
        _pad_row(params["conv1"]["gamma"]), _pad_row(params["conv1"]["beta"]),
        _pad_row(params["conv2"]["gamma"]), _pad_row(params["conv2"]["beta"]),
        _pad_row(params["conv3"]["gamma"]), _pad_row(params["conv3"]["beta"]),
        _pad_row(jnp.concatenate([params["fc_mu"]["b"], params["fc_var"]["b"]])),
        jnp.zeros((128,), jnp.float32),
    ])

    return {
        "w1": _conv_w_flat(params["conv1"]["w"]),
        "g2": _build_gather_matrix(batch, h1, w1, h2, w2, 4, 2, 1, "n_major"),
        "w2": _conv_w_flat(params["conv2"]["w"]),
        "g3": _build_gather_matrix(batch, h2, w2, h3, w3, 3, 2, 1, "pos_major"),
        "w3": _conv_w_flat(params["conv3"]["w"]),
        "wh": wh,
        "slab": slab,
    }


# -----------------------------------------------------------------------------
# Pure-JAX reference (mirrors the PyTorch module, same bf16-operand / f32-accum recipe)
# -----------------------------------------------------------------------------
def reference_forward(params, x_nchw, eps):
    bf16, f32 = jnp.bfloat16, jnp.float32

    def conv_bn_relu(x, p, stride):
        y = jax.lax.conv_general_dilated(
            x.astype(bf16), p["w"].astype(bf16),
            window_strides=(stride, stride), padding=((1, 1), (1, 1)),
            dimension_numbers=("NCHW", "OIHW", "NCHW"),
            preferred_element_type=f32)
        y = y + p["b"].reshape(1, -1, 1, 1)
        mean = jnp.mean(y, axis=(0, 2, 3), keepdims=True)
        var = jnp.mean((y - mean) ** 2, axis=(0, 2, 3), keepdims=True)
        y = (y - mean) * jax.lax.rsqrt(var + _BN_EPS)
        y = y * p["gamma"].reshape(1, -1, 1, 1) + p["beta"].reshape(1, -1, 1, 1)
        return jnp.maximum(y, 0.0)

    h = conv_bn_relu(x_nchw, params["conv1"], 2)
    h = conv_bn_relu(h, params["conv2"], 2)
    h = conv_bn_relu(h, params["conv3"], 2)
    feat = h.reshape(h.shape[0], -1).astype(bf16)          # PyTorch NCHW Flatten
    mu = jnp.dot(feat, params["fc_mu"]["w"].T.astype(bf16),
                 preferred_element_type=f32) + params["fc_mu"]["b"]
    lv = jnp.dot(feat, params["fc_var"]["w"].T.astype(bf16),
                 preferred_element_type=f32) + params["fc_var"]["b"]
    z = eps * jnp.exp(0.5 * lv) + mu
    return [z, mu, lv]


# -----------------------------------------------------------------------------
if __name__ == "__main__":
    # hparams implied by the module: num_channels=4, latent_dim=32,
    # encoder_output_size = 64*2*2 (16x16 input -> 8 -> 4 -> 2 through 3 stride-2 convs).
    NUM_CHANNELS, LATENT_DIM = 4, 32
    N, H, W = 2, 16, 16
    ENCODER_OUTPUT_SIZE = 64 * 2 * 2

    key = jax.random.PRNGKey(0)
    k_params, k_x, k_eps = jax.random.split(key, 3)

    params = init_params(k_params, NUM_CHANNELS, LATENT_DIM, ENCODER_OUTPUT_SIZE)
    kparams = pack_params_for_kernel(params, N, H, W, LATENT_DIM)

    x = jax.random.normal(k_x, (N, NUM_CHANNELS, H, W), jnp.float32)
    # TODO(synk): torch.randn_like RNG is not bit-reproducible; eps ~ N(0,1) is drawn with jax.random.
    eps = jax.random.normal(k_eps, (N, LATENT_DIM), jnp.float32)

    fwd = jax.jit(vae_encoder_forward)
    z, mu, log_var = fwd(kparams, x, eps)
    jax.block_until_ready((z, mu, log_var))

    assert z.shape == (N, LATENT_DIM) and mu.shape == (N, LATENT_DIM) and log_var.shape == (N, LATENT_DIM)
    assert jnp.all(jnp.isfinite(z)) and jnp.all(jnp.isfinite(mu)) and jnp.all(jnp.isfinite(log_var))

    # Cross-check against the pure-JAX reference of the PyTorch module (same bf16-operand
    # recipe -> differences are only f32 accumulation order; tolerance tightened vs 5e-2).
    z_r, mu_r, lv_r = reference_forward(params, x, eps)
    max_diff = max(float(jnp.max(jnp.abs(z - z_r))),
                   float(jnp.max(jnp.abs(mu - mu_r))),
                   float(jnp.max(jnp.abs(log_var - lv_r))))
    assert max_diff < 5e-3, f"kernel/reference mismatch: max abs diff = {max_diff}"

    print("KERNEL_OK")
</pallas_src>

<mosaic_0001>
module attributes {stable_mosaic.version = 11 : i64} {
  func.func @_vae_encoder_kernel(%arg0: memref<128x64xbf16, #tpu.memory_space<vmem>>, %arg1: memref<64x32xbf16, #tpu.memory_space<vmem>>, %arg2: memref<512x128xbf16, #tpu.memory_space<vmem>>, %arg3: memref<512x32xbf16, #tpu.memory_space<vmem>>, %arg4: memref<72x32xbf16, #tpu.memory_space<vmem>>, %arg5: memref<288x64xbf16, #tpu.memory_space<vmem>>, %arg6: memref<256x64xbf16, #tpu.memory_space<vmem>>, %arg7: memref<8x128xf32, #tpu.memory_space<vmem>>, %arg8: memref<2x32xf32, #tpu.memory_space<vmem>>, %arg9: memref<2x96xf32, #tpu.memory_space<vmem>>) attributes {dimension_semantics = [], scalar_prefetch = 0 : i64, scratch_operands = 0 : i64, tpu.core_type = #tpu.core_type<tc>} {
    %c0 = arith.constant 0 : index
    %c0_0 = arith.constant 0 : index
    %0 = vector.load %arg7[%c0, %c0_0] : memref<8x128xf32, #tpu.memory_space<vmem>>, vector<8x128xf32>
    %c0_1 = arith.constant 0 : index
    %c0_2 = arith.constant 0 : index
    %1 = vector.load %arg0[%c0_1, %c0_2] : memref<128x64xbf16, #tpu.memory_space<vmem>>, vector<128x64xbf16>
    %c0_3 = arith.constant 0 : index
    %c0_4 = arith.constant 0 : index
    %2 = vector.load %arg1[%c0_3, %c0_4] : memref<64x32xbf16, #tpu.memory_space<vmem>>, vector<64x32xbf16>
    %cst = arith.constant dense<0.000000e+00> : vector<128x32xf32>
    %3 = tpu.matmul %1, %2, %cst {dimension_numbers = #tpu.dot_dimension_numbers<[1], [0], [0], [1], [0, 0, 1, 1], [], []>} : vector<128x64xbf16>, vector<64x32xbf16>, vector<128x32xf32> -> vector<128x32xf32>
    %4 = vector.extract_strided_slice %0 {offsets = [0, 0], sizes = [1, 32], strides = [1, 1]} : vector<8x128xf32> to vector<1x32xf32>
    %5 = vector.extract_strided_slice %0 {offsets = [1, 0], sizes = [1, 32], strides = [1, 1]} : vector<8x128xf32> to vector<1x32xf32>
    %cst_5 = arith.constant dense<0.000000e+00> : vector<32xf32>
    %6 = vector.multi_reduction <add>, %3, %cst_5 [0] : vector<128x32xf32> to vector<32xf32>
    %7 = vector.shape_cast %6 : vector<32xf32> to vector<1x32xf32>
    %cst_6 = arith.constant 1.280000e+02 : f32
    %8 = vector.broadcast %cst_6 : f32 to vector<1x32xf32>
    %9 = arith.divf %7, %8 : vector<1x32xf32>
    %10 = vector.broadcast %9 : vector<1x32xf32> to vector<128x32xf32>
    %11 = arith.subf %3, %10 : vector<128x32xf32>
    %12 = arith.mulf %11, %11 : vector<128x32xf32>
    %cst_7 = arith.constant dense<0.000000e+00> : vector<32xf32>
    %13 = vector.multi_reduction <add>, %12, %cst_7 [0] : vector<128x32xf32> to vector<32xf32>
    %14 = vector.shape_cast %13 : vector<32xf32> to vector<1x32xf32>
    %cst_8 = arith.constant 1.280000e+02 : f32
    %15 = vector.broadcast %cst_8 : f32 to vector<1x32xf32>
    %16 = arith.divf %14, %15 : vector<1x32xf32>
    %cst_9 = arith.constant 9.99999974E-6 : f32
    %17 = vector.broadcast %cst_9 : f32 to vector<1x32xf32>
    %18 = arith.addf %16, %17 : vector<1x32xf32>
    %19 = math.rsqrt %18 : vector<1x32xf32>
    %20 = vector.broadcast %19 : vector<1x32xf32> to vector<128x32xf32>
    %21 = arith.mulf %11, %20 : vector<128x32xf32>
    %22 = vector.broadcast %4 : vector<1x32xf32> to vector<128x32xf32>
    %23 = arith.mulf %21, %22 : vector<128x32xf32>
    %24 = vector.broadcast %5 : vector<1x32xf32> to vector<128x32xf32>
    %25 = arith.addf %23, %24 : vector<128x32xf32>
    %cst_10 = arith.constant 0.000000e+00 : f32
    %26 = vector.broadcast %cst_10 : f32 to vector<128x32xf32>
    %27 = arith.maximumf %25, %26 : vector<128x32xf32>
    %28 = arith.truncf %27 : vector<128x32xf32> to vector<128x32xbf16>
    %c0_11 = arith.constant 0 : index
    %c0_12 = arith.constant 0 : index
    %29 = vector.load %arg2[%c0_11, %c0_12] : memref<512x128xbf16, #tpu.memory_space<vmem>>, vector<512x128xbf16>
    %cst_13 = arith.constant dense<0.000000e+00> : vector<512x32xf32>
    %30 = tpu.matmul %29, %28, %cst_13 {dimension_numbers = #tpu.dot_dimension_numbers<[1], [0], [0], [1], [0, 0, 1, 1], [], []>} : vector<512x128xbf16>, vector<128x32xbf16>, vector<512x32xf32> -> vector<512x32xf32>
    %31 = arith.truncf %30 : vector<512x32xf32> to vector<512x32xbf16>
    %32 = vector.extract_strided_slice %31 {offsets = [0, 0], sizes = [32, 32], strides = [1, 1]} : vector<512x32xbf16> to vector<32x32xbf16>
    %c0_14 = arith.constant 0 : index
    %c0_15 = arith.constant 0 : index
    %33 = vector.load %arg3[%c0_14, %c0_15] : memref<512x32xbf16, #tpu.memory_space<vmem>>, vector<32x32xbf16>
    %cst_16 = arith.constant dense<0.000000e+00> : vector<32x32xf32>
    %34 = tpu.matmul %32, %33, %cst_16 {dimension_numbers = #tpu.dot_dimension_numbers<[1], [0], [0], [1], [0, 0, 1, 1], [], []>} : vector<32x32xbf16>, vector<32x32xbf16>, vector<32x32xf32> -> vector<32x32xf32>
    %35 = vector.extract_strided_slice %31 {offsets = [32, 0], sizes = [32, 32], strides = [1, 1]} : vector<512x32xbf16> to vector<32x32xbf16>
    %c32 = arith.constant 32 : index
    %c0_17 = arith.constant 0 : index
    %36 = vector.load %arg3[%c32, %c0_17] : memref<512x32xbf16, #tpu.memory_space<vmem>>, vector<32x32xbf16>
    %cst_18 = arith.constant dense<0.000000e+00> : vector<32x32xf32>
    %37 = tpu.matmul %35, %36, %cst_18 {dimension_numbers = #tpu.dot_dimension_numbers<[1], [0], [0], [1], [0, 0, 1, 1], [], []>} : vector<32x32xbf16>, vector<32x32xbf16>, vector<32x32xf32> -> vector<32x32xf32>
    %38 = arith.addf %34, %37 : vector<32x32xf32>
    %39 = vector.extract_strided_slice %31 {offsets = [64, 0], sizes = [32, 32], strides = [1, 1]} : vector<512x32xbf16> to vector<32x32xbf16>
    %c64 = arith.constant 64 : index
    %c0_19 = arith.constant 0 : index
    %40 = vector.load %arg3[%c64, %c0_19] : memref<512x32xbf16, #tpu.memory_space<vmem>>, vector<32x32xbf16>
    %cst_20 = arith.constant dense<0.000000e+00> : vector<32x32xf32>
    %41 = tpu.matmul %39, %40, %cst_20 {dimension_numbers = #tpu.dot_dimension_numbers<[1], [0], [0], [1], [0, 0, 1, 1], [], []>} : vector<32x32xbf16>, vector<32x32xbf16>, vector<32x32xf32> -> vector<32x32xf32>
    %42 = arith.addf %38, %41 : vector<32x32xf32>
    %43 = vector.extract_strided_slice %31 {offsets = [96, 0], sizes = [32, 32], strides = [1, 1]} : vector<512x32xbf16> to vector<32x32xbf16>
    %c96 = arith.constant 96 : index
    %c0_21 = arith.constant 0 : index
    %44 = vector.load %arg3[%c96, %c0_21] : memref<512x32xbf16, #tpu.memory_space<vmem>>, vector<32x32xbf16>
    %cst_22 = arith.constant dense<0.000000e+00> : vector<32x32xf32>
    %45 = tpu.matmul %43, %44, %cst_22 {dimension_numbers = #tpu.dot_dimension_numbers<[1], [0], [0], [1], [0, 0, 1, 1], [], []>} : vector<32x32xbf16>, vector<32x32xbf16>, vector<32x32xf32> -> vector<32x32xf32>
    %46 = arith.addf %42, %45 : vector<32x32xf32>
    %47 = vector.extract_strided_slice %31 {offsets = [128, 0], sizes = [32, 32], strides = [1, 1]} : vector<512x32xbf16> to vector<32x32xbf16>
    %c128 = arith.constant 128 : index
    %c0_23 = arith.constant 0 : index
    %48 = vector.load %arg3[%c128, %c0_23] : memref<512x32xbf16, #tpu.memory_space<vmem>>, vector<32x32xbf16>
    %cst_24 = arith.constant dense<0.000000e+00> : vector<32x32xf32>
    %49 = tpu.matmul %47, %48, %cst_24 {dimension_numbers = #tpu.dot_dimension_numbers<[1], [0], [0], [1], [0, 0, 1, 1], [], []>} : vector<32x32xbf16>, vector<32x32xbf16>, vector<32x32xf32> -> vector<32x32xf32>
    %50 = arith.addf %46, %49 : vector<32x32xf32>
    %51 = vector.extract_strided_slice %31 {offsets = [160, 0], sizes = [32, 32], strides = [1, 1]} : vector<512x32xbf16> to vector<32x32xbf16>
    %c160 = arith.constant 160 : index
    %c0_25 = arith.constant 0 : index
    %52 = vector.load %arg3[%c160, %c0_25] : memref<512x32xbf16, #tpu.memory_space<vmem>>, vector<32x32xbf16>
    %cst_26 = arith.constant dense<0.000000e+00> : vector<32x32xf32>
    %53 = tpu.matmul %51, %52, %cst_26 {dimension_numbers = #tpu.dot_dimension_numbers<[1], [0], [0], [1], [0, 0, 1, 1], [], []>} : vector<32x32xbf16>, vector<32x32xbf16>, vector<32x32xf32> -> vector<32x32xf32>
    %54 = arith.addf %50, %53 : vector<32x32xf32>
    %55 = vector.extract_strided_slice %31 {offsets = [192, 0], sizes = [32, 32], strides = [1, 1]} : vector<512x32xbf16> to vector<32x32xbf16>
    %c192 = arith.constant 192 : index
    %c0_27 = arith.constant 0 : index
    %56 = vector.load %arg3[%c192, %c0_27] : memref<512x32xbf16, #tpu.memory_space<vmem>>, vector<32x32xbf16>
    %cst_28 = arith.constant dense<0.000000e+00> : vector<32x32xf32>
    %57 = tpu.matmul %55, %56, %cst_28 {dimension_numbers = #tpu.dot_dimension_numbers<[1], [0], [0], [1], [0, 0, 1, 1], [], []>} : vector<32x32xbf16>, vector<32x32xbf16>, vector<32x32xf32> -> vector<32x32xf32>
    %58 = arith.addf %54, %57 : vector<32x32xf32>
    %59 = vector.extract_strided_slice %31 {offsets = [224, 0], sizes = [32, 32], strides = [1, 1]} : vector<512x32xbf16> to vector<32x32xbf16>
    %c224 = arith.constant 224 : index
    %c0_29 = arith.constant 0 : index
    %60 = vector.load %arg3[%c224, %c0_29] : memref<512x32xbf16, #tpu.memory_space<vmem>>, vector<32x32xbf16>
    %cst_30 = arith.constant dense<0.000000e+00> : vector<32x32xf32>
    %61 = tpu.matmul %59, %60, %cst_30 {dimension_numbers = #tpu.dot_dimension_numbers<[1], [0], [0], [1], [0, 0, 1, 1], [], []>} : vector<32x32xbf16>, vector<32x32xbf16>, vector<32x32xf32> -> vector<32x32xf32>
    %62 = arith.addf %58, %61 : vector<32x32xf32>
    %63 = vector.extract_strided_slice %31 {offsets = [256, 0], sizes = [32, 32], strides = [1, 1]} : vector<512x32xbf16> to vector<32x32xbf16>
    %c256 = arith.constant 256 : index
    %c0_31 = arith.constant 0 : index
    %64 = vector.load %arg3[%c256, %c0_31] : memref<512x32xbf16, #tpu.memory_space<vmem>>, vector<32x32xbf16>
    %cst_32 = arith.constant dense<0.000000e+00> : vector<32x32xf32>
    %65 = tpu.matmul %63, %64, %cst_32 {dimension_numbers = #tpu.dot_dimension_numbers<[1], [0], [0], [1], [0, 0, 1, 1], [], []>} : vector<32x32xbf16>, vector<32x32xbf16>, vector<32x32xf32> -> vector<32x32xf32>
    %66 = arith.addf %62, %65 : vector<32x32xf32>
    %67 = vector.extract_strided_slice %31 {offsets = [288, 0], sizes = [32, 32], strides = [1, 1]} : vector<512x32xbf16> to vector<32x32xbf16>
    %c288 = arith.constant 288 : index
    %c0_33 = arith.constant 0 : index
    %68 = vector.load %arg3[%c288, %c0_33] : memref<512x32xbf16, #tpu.memory_space<vmem>>, vector<32x32xbf16>
    %cst_34 = arith.constant dense<0.000000e+00> : vector<32x32xf32>
    %69 = tpu.matmul %67, %68, %cst_34 {dimension_numbers = #tpu.dot_dimension_numbers<[1], [0], [0], [1], [0, 0, 1, 1], [], []>} : vector<32x32xbf16>, vector<32x32xbf16>, vector<32x32xf32> -> vector<32x32xf32>
    %70 = arith.addf %66, %69 : vector<32x32xf32>
    %71 = vector.extract_strided_slice %31 {offsets = [320, 0], sizes = [32, 32], strides = [1, 1]} : vector<512x32xbf16> to vector<32x32xbf16>
    %c320 = arith.constant 320 : index
    %c0_35 = arith.constant 0 : index
    %72 = vector.load %arg3[%c320, %c0_35] : memref<512x32xbf16, #tpu.memory_space<vmem>>, vector<32x32xbf16>
    %cst_36 = arith.constant dense<0.000000e+00> : vector<32x32xf32>
    %73 = tpu.matmul %71, %72, %cst_36 {dimension_numbers = #tpu.dot_dimension_numbers<[1], [0], [0], [1], [0, 0, 1, 1], [], []>} : vector<32x32xbf16>, vector<32x32xbf16>, vector<32x32xf32> -> vector<32x32xf32>
    %74 = arith.addf %70, %73 : vector<32x32xf32>
    %75 = vector.extract_strided_slice %31 {offsets = [352, 0], sizes = [32, 32], strides = [1, 1]} : vector<512x32xbf16> to vector<32x32xbf16>
    %c352 = arith.constant 352 : index
    %c0_37 = arith.constant 0 : index
    %76 = vector.load %arg3[%c352, %c0_37] : memref<512x32xbf16, #tpu.memory_space<vmem>>, vector<32x32xbf16>
    %cst_38 = arith.constant dense<0.000000e+00> : vector<32x32xf32>
    %77 = tpu.matmul %75, %76, %cst_38 {dimension_numbers = #tpu.dot_dimension_numbers<[1], [0], [0], [1], [0, 0, 1, 1], [], []>} : vector<32x32xbf16>, vector<32x32xbf16>, vector<32x32xf32> -> vector<32x32xf32>
    %78 = arith.addf %74, %77 : vector<32x32xf32>
    %79 = vector.extract_strided_slice %31 {offsets = [384, 0], sizes = [32, 32], strides = [1, 1]} : vector<512x32xbf16> to vector<32x32xbf16>
    %c384 = arith.constant 384 : index
    %c0_39 = arith.constant 0 : index
    %80 = vector.load %arg3[%c384, %c0_39] : memref<512x32xbf16, #tpu.memory_space<vmem>>, vector<32x32xbf16>
    %cst_40 = arith.constant dense<0.000000e+00> : vector<32x32xf32>
    %81 = tpu.matmul %79, %80, %cst_40 {dimension_numbers = #tpu.dot_dimension_numbers<[1], [0], [0], [1], [0, 0, 1, 1], [], []>} : vector<32x32xbf16>, vector<32x32xbf16>, vector<32x32xf32> -> vector<32x32xf32>
    %82 = arith.addf %78, %81 : vector<32x32xf32>
    %83 = vector.extract_strided_slice %31 {offsets = [416, 0], sizes = [32, 32], strides = [1, 1]} : vector<512x32xbf16> to vector<32x32xbf16>
    %c416 = arith.constant 416 : index
    %c0_41 = arith.constant 0 : index
    %84 = vector.load %arg3[%c416, %c0_41] : memref<512x32xbf16, #tpu.memory_space<vmem>>, vector<32x32xbf16>
    %cst_42 = arith.constant dense<0.000000e+00> : vector<32x32xf32>
    %85 = tpu.matmul %83, %84, %cst_42 {dimension_numbers = #tpu.dot_dimension_numbers<[1], [0], [0], [1], [0, 0, 1, 1], [], []>} : vector<32x32xbf16>, vector<32x32xbf16>, vector<32x32xf32> -> vector<32x32xf32>
    %86 = arith.addf %82, %85 : vector<32x32xf32>
    %87 = vector.extract_strided_slice %31 {offsets = [448, 0], sizes = [32, 32], strides = [1, 1]} : vector<512x32xbf16> to vector<32x32xbf16>
    %c448 = arith.constant 448 : index
    %c0_43 = arith.constant 0 : index
    %88 = vector.load %arg3[%c448, %c0_43] : memref<512x32xbf16, #tpu.memory_space<vmem>>, vector<32x32xbf16>
    %cst_44 = arith.constant dense<0.000000e+00> : vector<32x32xf32>
    %89 = tpu.matmul %87, %88, %cst_44 {dimension_numbers = #tpu.dot_dimension_numbers<[1], [0], [0], [1], [0, 0, 1, 1], [], []>} : vector<32x32xbf16>, vector<32x32xbf16>, vector<32x32xf32> -> vector<32x32xf32>
    %90 = arith.addf %86, %89 : vector<32x32xf32>
    %91 = vector.extract_strided_slice %31 {offsets = [480, 0], sizes = [32, 32], strides = [1, 1]} : vector<512x32xbf16> to vector<32x32xbf16>
    %c480 = arith.constant 480 : index
    %c0_45 = arith.constant 0 : index
    %92 = vector.load %arg3[%c480, %c0_45] : memref<512x32xbf16, #tpu.memory_space<vmem>>, vector<32x32xbf16>
    %cst_46 = arith.constant dense<0.000000e+00> : vector<32x32xf32>
    %93 = tpu.matmul %91, %92, %cst_46 {dimension_numbers = #tpu.dot_dimension_numbers<[1], [0], [0], [1], [0, 0, 1, 1], [], []>} : vector<32x32xbf16>, vector<32x32xbf16>, vector<32x32xf32> -> vector<32x32xf32>
    %94 = arith.addf %90, %93 : vector<32x32xf32>
    %95 = vector.extract_strided_slice %0 {offsets = [2, 0], sizes = [1, 32], strides = [1, 1]} : vector<8x128xf32> to vector<1x32xf32>
    %96 = vector.extract_strided_slice %0 {offsets = [3, 0], sizes = [1, 32], strides = [1, 1]} : vector<8x128xf32> to vector<1x32xf32>
    %cst_47 = arith.constant dense<0.000000e+00> : vector<32xf32>
    %97 = vector.multi_reduction <add>, %94, %cst_47 [0] : vector<32x32xf32> to vector<32xf32>
    %98 = vector.shape_cast %97 : vector<32xf32> to vector<1x32xf32>
    %cst_48 = arith.constant 3.200000e+01 : f32
    %99 = vector.broadcast %cst_48 : f32 to vector<1x32xf32>
    %100 = arith.divf %98, %99 : vector<1x32xf32>
    %101 = vector.broadcast %100 : vector<1x32xf32> to vector<32x32xf32>
    %102 = arith.subf %94, %101 : vector<32x32xf32>
    %103 = arith.mulf %102, %102 : vector<32x32xf32>
    %cst_49 = arith.constant dense<0.000000e+00> : vector<32xf32>
    %104 = vector.multi_reduction <add>, %103, %cst_49 [0] : vector<32x32xf32> to vector<32xf32>
    %105 = vector.shape_cast %104 : vector<32xf32> to vector<1x32xf32>
    %cst_50 = arith.constant 3.200000e+01 : f32
    %106 = vector.broadcast %cst_50 : f32 to vector<1x32xf32>
    %107 = arith.divf %105, %106 : vector<1x32xf32>
    %cst_51 = arith.constant 9.99999974E-6 : f32
    %108 = vector.broadcast %cst_51 : f32 to vector<1x32xf32>
    %109 = arith.addf %107, %108 : vector<1x32xf32>
    %110 = math.rsqrt %109 : vector<1x32xf32>
    %111 = vector.broadcast %110 : vector<1x32xf32> to vector<32x32xf32>
    %112 = arith.mulf %102, %111 : vector<32x32xf32>
    %113 = vector.broadcast %95 : vector<1x32xf32> to vector<32x32xf32>
    %114 = arith.mulf %112, %113 : vector<32x32xf32>
    %115 = vector.broadcast %96 : vector<1x32xf32> to vector<32x32xf32>
    %116 = arith.addf %114, %115 : vector<32x32xf32>
    %cst_52 = arith.constant 0.000000e+00 : f32
    %117 = vector.broadcast %cst_52 : f32 to vector<32x32xf32>
    %118 = arith.maximumf %116, %117 : vector<32x32xf32>
    %119 = arith.truncf %118 : vector<32x32xf32> to vector<32x32xbf16>
    %c0_53 = arith.constant 0 : index
    %c0_54 = arith.constant 0 : index
    %120 = vector.load %arg4[%c0_53, %c0_54] : memref<72x32xbf16, #tpu.memory_space<vmem>>, vector<72x32xbf16>
    %cst_55 = arith.constant dense<0.000000e+00> : vector<72x32xf32>
    %121 = tpu.matmul %120, %119, %cst_55 {dimension_numbers = #tpu.dot_dimension_numbers<[1], [0], [0], [1], [0, 0, 1, 1], [], []>} : vector<72x32xbf16>, vector<32x32xbf16>, vector<72x32xf32> -> vector<72x32xf32>
    %122 = arith.truncf %121 : vector<72x32xf32> to vector<72x32xbf16>
    %123 = vector.extract_strided_slice %122 {offsets = [0, 0], sizes = [8, 32], strides = [1, 1]} : vector<72x32xbf16> to vector<8x32xbf16>
    %c0_56 = arith.constant 0 : index
    %c0_57 = arith.constant 0 : index
    %124 = vector.load %arg5[%c0_56, %c0_57] : memref<288x64xbf16, #tpu.memory_space<vmem>>, vector<32x64xbf16>
    %cst_58 = arith.constant dense<0.000000e+00> : vector<8x64xf32>
    %125 = tpu.matmul %123, %124, %cst_58 {dimension_numbers = #tpu.dot_dimension_numbers<[1], [0], [0], [1], [0, 0, 1, 1], [], []>} : vector<8x32xbf16>, vector<32x64xbf16>, vector<8x64xf32> -> vector<8x64xf32>
    %126 = vector.extract_strided_slice %122 {offsets = [8, 0], sizes = [8, 32], strides = [1, 1]} : vector<72x32xbf16> to vector<8x32xbf16>
    %c32_59 = arith.constant 32 : index
    %c0_60 = arith.constant 0 : index
    %127 = vector.load %arg5[%c32_59, %c0_60] : memref<288x64xbf16, #tpu.memory_space<vmem>>, vector<32x64xbf16>
    %cst_61 = arith.constant dense<0.000000e+00> : vector<8x64xf32>
    %128 = tpu.matmul %126, %127, %cst_61 {dimension_numbers = #tpu.dot_dimension_numbers<[1], [0], [0], [1], [0, 0, 1, 1], [], []>} : vector<8x32xbf16>, vector<32x64xbf16>, vector<8x64xf32> -> vector<8x64xf32>
    %129 = arith.addf %125, %128 : vector<8x64xf32>
    %130 = vector.extract_strided_slice %122 {offsets = [16, 0], sizes = [8, 32], strides = [1, 1]} : vector<72x32xbf16> to vector<8x32xbf16>
    %c64_62 = arith.constant 64 : index
    %c0_63 = arith.constant 0 : index
    %131 = vector.load %arg5[%c64_62, %c0_63] : memref<288x64xbf16, #tpu.memory_space<vmem>>, vector<32x64xbf16>
    %cst_64 = arith.constant dense<0.000000e+00> : vector<8x64xf32>
    %132 = tpu.matmul %130, %131, %cst_64 {dimension_numbers = #tpu.dot_dimension_numbers<[1], [0], [0], [1], [0, 0, 1, 1], [], []>} : vector<8x32xbf16>, vector<32x64xbf16>, vector<8x64xf32> -> vector<8x64xf32>
    %133 = arith.addf %129, %132 : vector<8x64xf32>
    %134 = vector.extract_strided_slice %122 {offsets = [24, 0], sizes = [8, 32], strides = [1, 1]} : vector<72x32xbf16> to vector<8x32xbf16>
    %c96_65 = arith.constant 96 : index
    %c0_66 = arith.constant 0 : index
    %135 = vector.load %arg5[%c96_65, %c0_66] : memref<288x64xbf16, #tpu.memory_space<vmem>>, vector<32x64xbf16>
    %cst_67 = arith.constant dense<0.000000e+00> : vector<8x64xf32>
    %136 = tpu.matmul %134, %135, %cst_67 {dimension_numbers = #tpu.dot_dimension_numbers<[1], [0], [0], [1], [0, 0, 1, 1], [], []>} : vector<8x32xbf16>, vector<32x64xbf16>, vector<8x64xf32> -> vector<8x64xf32>
    %137 = arith.addf %133, %136 : vector<8x64xf32>
    %138 = vector.extract_strided_slice %122 {offsets = [32, 0], sizes = [8, 32], strides = [1, 1]} : vector<72x32xbf16> to vector<8x32xbf16>
    %c128_68 = arith.constant 128 : index
    %c0_69 = arith.constant 0 : index
    %139 = vector.load %arg5[%c128_68, %c0_69] : memref<288x64xbf16, #tpu.memory_space<vmem>>, vector<32x64xbf16>
    %cst_70 = arith.constant dense<0.000000e+00> : vector<8x64xf32>
    %140 = tpu.matmul %138, %139, %cst_70 {dimension_numbers = #tpu.dot_dimension_numbers<[1], [0], [0], [1], [0, 0, 1, 1], [], []>} : vector<8x32xbf16>, vector<32x64xbf16>, vector<8x64xf32> -> vector<8x64xf32>
    %141 = arith.addf %137, %140 : vector<8x64xf32>
    %142 = vector.extract_strided_slice %122 {offsets = [40, 0], sizes = [8, 32], strides = [1, 1]} : vector<72x32xbf16> to vector<8x32xbf16>
    %c160_71 = arith.constant 160 : index
    %c0_72 = arith.constant 0 : index
    %143 = vector.load %arg5[%c160_71, %c0_72] : memref<288x64xbf16, #tpu.memory_space<vmem>>, vector<32x64xbf16>
    %cst_73 = arith.constant dense<0.000000e+00> : vector<8x64xf32>
    %144 = tpu.matmul %142, %143, %cst_73 {dimension_numbers = #tpu.dot_dimension_numbers<[1], [0], [0], [1], [0, 0, 1, 1], [], []>} : vector<8x32xbf16>, vector<32x64xbf16>, vector<8x64xf32> -> vector<8x64xf32>
    %145 = arith.addf %141, %144 : vector<8x64xf32>
    %146 = vector.extract_strided_slice %122 {offsets = [48, 0], sizes = [8, 32], strides = [1, 1]} : vector<72x32xbf16> to vector<8x32xbf16>
    %c192_74 = arith.constant 192 : index
    %c0_75 = arith.constant 0 : index
    %147 = vector.load %arg5[%c192_74, %c0_75] : memref<288x64xbf16, #tpu.memory_space<vmem>>, vector<32x64xbf16>
    %cst_76 = arith.constant dense<0.000000e+00> : vector<8x64xf32>
    %148 = tpu.matmul %146, %147, %cst_76 {dimension_numbers = #tpu.dot_dimension_numbers<[1], [0], [0], [1], [0, 0, 1, 1], [], []>} : vector<8x32xbf16>, vector<32x64xbf16>, vector<8x64xf32> -> vector<8x64xf32>
    %149 = arith.addf %145, %148 : vector<8x64xf32>
    %150 = vector.extract_strided_slice %122 {offsets = [56, 0], sizes = [8, 32], strides = [1, 1]} : vector<72x32xbf16> to vector<8x32xbf16>
    %c224_77 = arith.constant 224 : index
    %c0_78 = arith.constant 0 : index
    %151 = vector.load %arg5[%c224_77, %c0_78] : memref<288x64xbf16, #tpu.memory_space<vmem>>, vector<32x64xbf16>
    %cst_79 = arith.constant dense<0.000000e+00> : vector<8x64xf32>
    %152 = tpu.matmul %150, %151, %cst_79 {dimension_numbers = #tpu.dot_dimension_numbers<[1], [0], [0], [1], [0, 0, 1, 1], [], []>} : vector<8x32xbf16>, vector<32x64xbf16>, vector<8x64xf32> -> vector<8x64xf32>
    %153 = arith.addf %149, %152 : vector<8x64xf32>
    %154 = vector.extract_strided_slice %122 {offsets = [64, 0], sizes = [8, 32], strides = [1, 1]} : vector<72x32xbf16> to vector<8x32xbf16>
    %c256_80 = arith.constant 256 : index
    %c0_81 = arith.constant 0 : index
    %155 = vector.load %arg5[%c256_80, %c0_81] : memref<288x64xbf16, #tpu.memory_space<vmem>>, vector<32x64xbf16>
    %cst_82 = arith.constant dense<0.000000e+00> : vector<8x64xf32>
    %156 = tpu.matmul %154, %155, %cst_82 {dimension_numbers = #tpu.dot_dimension_numbers<[1], [0], [0], [1], [0, 0, 1, 1], [], []>} : vector<8x32xbf16>, vector<32x64xbf16>, vector<8x64xf32> -> vector<8x64xf32>
    %157 = arith.addf %153, %156 : vector<8x64xf32>
    %158 = vector.extract_strided_slice %0 {offsets = [4, 0], sizes = [1, 64], strides = [1, 1]} : vector<8x128xf32> to vector<1x64xf32>
    %159 = vector.extract_strided_slice %0 {offsets = [5, 0], sizes = [1, 64], strides = [1, 1]} : vector<8x128xf32> to vector<1x64xf32>
    %cst_83 = arith.constant dense<0.000000e+00> : vector<64xf32>
    %160 = vector.multi_reduction <add>, %157, %cst_83 [0] : vector<8x64xf32> to vector<64xf32>
    %161 = vector.shape_cast %160 : vector<64xf32> to vector<1x64xf32>
    %cst_84 = arith.constant 8.000000e+00 : f32
    %162 = vector.broadcast %cst_84 : f32 to vector<1x64xf32>
    %163 = arith.divf %161, %162 : vector<1x64xf32>
    %164 = vector.broadcast %163 : vector<1x64xf32> to vector<8x64xf32>
    %165 = arith.subf %157, %164 : vector<8x64xf32>
    %166 = arith.mulf %165, %165 : vector<8x64xf32>
    %cst_85 = arith.constant dense<0.000000e+00> : vector<64xf32>
    %167 = vector.multi_reduction <add>, %166, %cst_85 [0] : vector<8x64xf32> to vector<64xf32>
    %168 = vector.shape_cast %167 : vector<64xf32> to vector<1x64xf32>
    %cst_86 = arith.constant 8.000000e+00 : f32
    %169 = vector.broadcast %cst_86 : f32 to vector<1x64xf32>
    %170 = arith.divf %168, %169 : vector<1x64xf32>
    %cst_87 = arith.constant 9.99999974E-6 : f32
    %171 = vector.broadcast %cst_87 : f32 to vector<1x64xf32>
    %172 = arith.addf %170, %171 : vector<1x64xf32>
    %173 = math.rsqrt %172 : vector<1x64xf32>
    %174 = vector.broadcast %173 : vector<1x64xf32> to vector<8x64xf32>
    %175 = arith.mulf %165, %174 : vector<8x64xf32>
    %176 = vector.broadcast %158 : vector<1x64xf32> to vector<8x64xf32>
    %177 = arith.mulf %175, %176 : vector<8x64xf32>
    %178 = vector.broadcast %159 : vector<1x64xf32> to vector<8x64xf32>
    %179 = arith.addf %177, %178 : vector<8x64xf32>
    %cst_88 = arith.constant 0.000000e+00 : f32
    %180 = vector.broadcast %cst_88 : f32 to vector<8x64xf32>
    %181 = arith.maximumf %179, %180 : vector<8x64xf32>
    %182 = arith.truncf %181 : vector<8x64xf32> to vector<8x64xbf16>
    %183 = vector.extract_strided_slice %182 {offsets = [0, 0], sizes = [2, 64], strides = [1, 1]} : vector<8x64xbf16> to vector<2x64xbf16>
    %c0_89 = arith.constant 0 : index
    %c0_90 = arith.constant 0 : index
    %184 = vector.load %arg6[%c0_89, %c0_90] : memref<256x64xbf16, #tpu.memory_space<vmem>>, vector<64x64xbf16>
    %cst_91 = arith.constant dense<0.000000e+00> : vector<2x64xf32>
    %185 = tpu.matmul %183, %184, %cst_91 {dimension_numbers = #tpu.dot_dimension_numbers<[1], [0], [0], [1], [0, 0, 1, 1], [], []>} : vector<2x64xbf16>, vector<64x64xbf16>, vector<2x64xf32> -> vector<2x64xf32>
    %186 = vector.extract_strided_slice %182 {offsets = [2, 0], sizes = [2, 64], strides = [1, 1]} : vector<8x64xbf16> to vector<2x64xbf16>
    %c64_92 = arith.constant 64 : index
    %c0_93 = arith.constant 0 : index
    %187 = vector.load %arg6[%c64_92, %c0_93] : memref<256x64xbf16, #tpu.memory_space<vmem>>, vector<64x64xbf16>
    %cst_94 = arith.constant dense<0.000000e+00> : vector<2x64xf32>
    %188 = tpu.matmul %186, %187, %cst_94 {dimension_numbers = #tpu.dot_dimension_numbers<[1], [0], [0], [1], [0, 0, 1, 1], [], []>} : vector<2x64xbf16>, vector<64x64xbf16>, vector<2x64xf32> -> vector<2x64xf32>
    %189 = arith.addf %185, %188 : vector<2x64xf32>
    %190 = vector.extract_strided_slice %182 {offsets = [4, 0], sizes = [2, 64], strides = [1, 1]} : vector<8x64xbf16> to vector<2x64xbf16>
    %c128_95 = arith.constant 128 : index
    %c0_96 = arith.constant 0 : index
    %191 = vector.load %arg6[%c128_95, %c0_96] : memref<256x64xbf16, #tpu.memory_space<vmem>>, vector<64x64xbf16>
    %cst_97 = arith.constant dense<0.000000e+00> : vector<2x64xf32>
    %192 = tpu.matmul %190, %191, %cst_97 {dimension_numbers = #tpu.dot_dimension_numbers<[1], [0], [0], [1], [0, 0, 1, 1], [], []>} : vector<2x64xbf16>, vector<64x64xbf16>, vector<2x64xf32> -> vector<2x64xf32>
    %193 = arith.addf %189, %192 : vector<2x64xf32>
    %194 = vector.extract_strided_slice %182 {offsets = [6, 0], sizes = [2, 64], strides = [1, 1]} : vector<8x64xbf16> to vector<2x64xbf16>
    %c192_98 = arith.constant 192 : index
    %c0_99 = arith.constant 0 : index
    %195 = vector.load %arg6[%c192_98, %c0_99] : memref<256x64xbf16, #tpu.memory_space<vmem>>, vector<64x64xbf16>
    %cst_100 = arith.constant dense<0.000000e+00> : vector<2x64xf32>
    %196 = tpu.matmul %194, %195, %cst_100 {dimension_numbers = #tpu.dot_dimension_numbers<[1], [0], [0], [1], [0, 0, 1, 1], [], []>} : vector<2x64xbf16>, vector<64x64xbf16>, vector<2x64xf32> -> vector<2x64xf32>
    %197 = arith.addf %193, %196 : vector<2x64xf32>
    %198 = vector.extract_strided_slice %0 {offsets = [6, 0], sizes = [1, 64], strides = [1, 1]} : vector<8x128xf32> to vector<1x64xf32>
    %199 = vector.broadcast %198 : vector<1x64xf32> to vector<2x64xf32>
    %200 = arith.addf %197, %199 : vector<2x64xf32>
    %201 = vector.extract_strided_slice %200 {offsets = [0, 0], sizes = [2, 32], strides = [1, 1]} : vector<2x64xf32> to vector<2x32xf32>
    %202 = vector.extract_strided_slice %200 {offsets = [0, 32], sizes = [2, 32], strides = [1, 1]} : vector<2x64xf32> to vector<2x32xf32>
    %c0_101 = arith.constant 0 : index
    %c0_102 = arith.constant 0 : index
    %203 = vector.load %arg8[%c0_101, %c0_102] : memref<2x32xf32, #tpu.memory_space<vmem>>, vector<2x32xf32>
    %cst_103 = arith.constant 5.000000e-01 : f32
    %204 = vector.broadcast %cst_103 : f32 to vector<2x32xf32>
    %205 = arith.mulf %204, %202 : vector<2x32xf32>
    %206 = math.exp %205 : vector<2x32xf32>
    %207 = arith.mulf %203, %206 : vector<2x32xf32>
    %208 = arith.addf %207, %201 : vector<2x32xf32>
    %c0_104 = arith.constant 0 : index
    %c0_105 = arith.constant 0 : index
    %209 = vector.load %arg9[%c0_104, %c0_105] : memref<2x96xf32, #tpu.memory_space<vmem>>, vector<2x32xf32>
    tpu.vector_store %arg9[%c0_104, %c0_105], %208 {strides = array<i32>} : memref<2x96xf32, #tpu.memory_space<vmem>>, vector<2x32xf32>,
    %c0_106 = arith.constant 0 : index
    %c32_107 = arith.constant 32 : index
    %210 = vector.load %arg9[%c0_106, %c32_107] : memref<2x96xf32, #tpu.memory_space<vmem>>, vector<2x64xf32>
    tpu.vector_store %arg9[%c0_106, %c32_107], %200 {strides = array<i32>} : memref<2x96xf32, #tpu.memory_space<vmem>>, vector<2x64xf32>,
    return
  }
}

</mosaic_0001>

<bundles_post_ra>
// kernel: vae_encoder_forward.1
= control target key start
LH: loop header
LB: loop body
LE: loop exit
PB: predicated region body
PF: predicated region fallthrough
CT: control target
= control target key end

     0   :  { %vm122_vm0 = vcmask 523264   ;;  %vm244_vm1 = vcmask 261120   ;;  %vm4247_vm2 = vmmov 0   ;;  %s4249_s21 = smov 32   ;;  %vm3295_vm3 = vcmask 254976   ;;  %s5001_s1 = inlined_call_operand.vmem [shape: bf16[64,32], index: 1, kind: input, shape index: {}]   ;;  %s5002_s0 = inlined_call_operand.vmem [shape: bf16[128,64], index: 0, kind: input, shape index: {}]   ;;  %s5003_s2 = inlined_call_operand.vmem [shape: bf16[512,128], index: 2, kind: input, shape index: {}]   ;;  %s5004_s7 = inlined_call_operand.vmem [shape: f32[8,128], index: 7, kind: input, shape index: {}]   ;;  %s5005_s3 = inlined_call_operand.vmem [shape: bf16[512,32], index: 3, kind: input, shape index: {}]   ;;  %s5006_s4 = inlined_call_operand.vmem [shape: bf16[72,32], index: 4, kind: input, shape index: {}]   ;;  %s5007_s5 = inlined_call_operand.vmem [shape: bf16[288,64], index: 5, kind: input, shape index: {}]   ;;  %s5008_s6 = inlined_call_operand.vmem [shape: bf16[256,64], index: 6, kind: input, shape index: {}]   ;;  %s5009_s8 = inlined_call_operand.vmem [shape: f32[2,32], index: 8, kind: input, shape index: {}]   ;;  %s5010_s9 = inlined_call_operand.vmem [shape: f32[2,96], index: 9, kind: output, shape index: {}]  }
   0x1   :  { %v4122_v0 = vld [vmem:[%s5001_s1] sm:$0xff]   ;;  %v4123_v1 = vld [vmem:[%s5001_s1 + $0x8] sm:$0xff]   ;;  %v4124_v2 = vld [vmem:[%s5001_s1 + $0x10] sm:$0xff]   ;;  %vm3301_vm4 = vcmask 779520  }
   0x2   :  { %3650 = vmatprep.subr.bf16.mxu0 %v4122_v0  ;;  %v4126_v3 = vld [vmem:[%s5002_s0] sm:$0xff]   ;;  %v4125_v4 = vld [vmem:[%s5001_s1 + $0x18] sm:$0xff]   ;;  %v4127_v5 = vld [vmem:[%s5002_s0 + $0x8] sm:$0xff]  }
   0x3   :  { %3651 = vmatpush3.bf16.msra.mxu0 %v4122_v0  ;;  %3658 = vmatprep.mubr.msk.bf16.mxu0 %vm122_vm0, %v4126_v3  ;;  %v4128_v6 = vld [vmem:[%s5002_s0 + $0x10] sm:$0xff]   ;;  %v4129_v7 = vld [vmem:[%s5002_s0 + $0x18] sm:$0xff]   ;;  %v4130_v8 = vld [vmem:[%s5002_s0 + $0x20] sm:$0xff]  }
   0x4   :  { %3652 = vmatprep.subr.bf16.mxu0 %v4123_v1  ;;  %v4131_v9 = vld [vmem:[%s5002_s0 + $0x28] sm:$0xff]   ;;  %v4132_v10 = vld [vmem:[%s5002_s0 + $0x30] sm:$0xff]   ;;  %v4133_v11 = vld [vmem:[%s5002_s0 + $0x38] sm:$0xff]  }
   0x5   :  { %v4134_v54 = vld [vmem:[%s5003_s2] sm:$0xff]  }
   0x6   :  { %3690 = vmatprep.mubr.bf16.mxu1 %v4134_v54 }
   0x7   :  { %3653 = vmatpush3.bf16.msra.mxu0 %v4123_v1 }
   0x8   :  { %3654 = vmatprep.subr.bf16.mxu0 %v4124_v2 }
   0xb   :  { %3655 = vmatpush3.bf16.msra.mxu0 %v4124_v2 }
   0xc   :  { %3656 = vmatprep.subr.bf16.mxu0 %v4125_v4 }
   0xf   :  { %3657 = vmatpush3.bf16.msra.mxu0 %v4125_v4 }
  0x12   :  { %3659 = vmatmul.mubr.msk.bf16.vlgmr.msra.gmra.mrb[0].mxu0 %vm122_vm0, %v4127_v5 }
  0x13   :  { %3662 = vmatprep.mubr.msk.bf16.mxu0 %vm122_vm0, %v4128_v6 }
  0x1a   :  { %3663 = vmatmul.mubr.msk.bf16.gmra.mrb[4].mxu0 %vm122_vm0, %v4129_v7 }
  0x1b   :  { %3666 = vmatprep.mubr.msk.bf16.mxu0 %vm122_vm0, %v4130_v8 }
  0x22   :  { %3667 = vmatmul.mubr.msk.bf16.gmra.mrb[8].mxu0 %vm122_vm0, %v4131_v9 }
  0x23   :  { %3670 = vmatprep.mubr.msk.bf16.mxu0 %vm122_vm0, %v4132_v10 }
  0x2a   :  { %3671 = vmatmul.mubr.msk.bf16.gmra.mrb[12].mxu0 %vm122_vm0, %v4133_v11 }
  0xe5   :  { %v3660_v12 = vpop.f32.mrb[0].mxu0 }
  0xe6   :  { %v181_v13 = vpop.f32.mrb[1].mxu0  ;;  %v248_v19 = vsel %vm244_vm1, %v3660_v12, 0.0 }
  0xe7   :  { %v3661_v14 = vpop.f32.mrb[2].mxu0  ;;  %v245_v16 = vsel %vm244_vm1, %v181_v13, 0.0 }
  0xe8   :  { %v184_v15 = vpop.f32.mrb[3].mxu0  ;;  %v250_v21 = vsel %vm244_vm1, %v3661_v14, 0.0 }
  0xe9   :  { %v246_v17 = vsel %vm244_vm1, %v184_v15, 0.0 }
  0xea   :  { %v247_v18 = vadd.f32 %v246_v17, %v245_v16 }
  0xec   :  { %v249_v20 = vadd.f32 %v248_v19, %v247_v18 }
  0xed   :  { %v3664_v22 = vpop.f32.mrb[4].mxu0 }
  0xee   :  { %v197_v23 = vpop.f32.mrb[5].mxu0  ;;  %v251_v24 = vadd.f32 %v250_v21, %v249_v20  ;;  %v256_v31 = vsel %vm244_vm1, %v3664_v22, 0.0 }
  0xef   :  { %v252_v25 = vsel %vm244_vm1, %v197_v23, 0.0  ;;  %v3665_v26 = vpop.f32.mrb[6].mxu0 }
  0xf0   :  { %v253_v27 = vadd.f32 %v252_v25, %v251_v24  ;;  %v200_v28 = vpop.f32.mrb[7].mxu0  ;;  %v258_v33 = vsel %vm244_vm1, %v3665_v26, 0.0 }
  0xf1   :  { %v254_v29 = vsel %vm244_vm1, %v200_v28, 0.0 }
  0xf2   :  { %v255_v30 = vadd.f32 %v254_v29, %v253_v27 }
  0xf4   :  { %v257_v32 = vadd.f32 %v256_v31, %v255_v30 }
  0xf5   :  { %v3668_v34 = vpop.f32.mrb[8].mxu0 }
  0xf6   :  { %v213_v35 = vpop.f32.mrb[9].mxu0  ;;  %v259_v36 = vadd.f32 %v258_v33, %v257_v32  ;;  %v264_v43 = vsel %vm244_vm1, %v3668_v34, 0.0 }
  0xf7   :  { %v260_v37 = vsel %vm244_vm1, %v213_v35, 0.0  ;;  %v3669_v38 = vpop.f32.mrb[10].mxu0 }
  0xf8   :  { %v261_v39 = vadd.f32 %v260_v37, %v259_v36  ;;  %v216_v40 = vpop.f32.mrb[11].mxu0  ;;  %v266_v45 = vsel %vm244_vm1, %v3669_v38, 0.0 }
  0xf9   :  { %v262_v41 = vsel %vm244_vm1, %v216_v40, 0.0 }
  0xfa   :  { %v263_v42 = vadd.f32 %v262_v41, %v261_v39 }
  0xfc   :  { %v265_v44 = vadd.f32 %v264_v43, %v263_v42 }
  0xfd   :  { %v3672_v46 = vpop.f32.mrb[12].mxu0 }
  0xfe   :  { %v229_v47 = vpop.f32.mrb[13].mxu0  ;;  %v267_v48 = vadd.f32 %v266_v45, %v265_v44  ;;  %v272_v56 = vsel %vm244_vm1, %v3672_v46, 0.0 }
  0xff   :  { %v268_v49 = vsel %vm244_vm1, %v229_v47, 0.0  ;;  %v3673_v50 = vpop.f32.mrb[14].mxu0 }
 0x100   :  { %v269_v51 = vadd.f32 %v268_v49, %v267_v48  ;;  %v232_v52 = vpop.f32.mrb[15].mxu0  ;;  %v274_v57 = vsel %vm244_vm1, %v3673_v50, 0.0 }
 0x101   :  { %v270_v53 = vsel %vm244_vm1, %v232_v52, 0.0 }
 0x102   :  { %v271_v55 = vadd.f32 %v270_v53, %v269_v51 }
 0x104   :  { %v273_v58 = vadd.f32 %v272_v56, %v271_v55 }
 0x106   :  { %v275_v59 = vadd.f32 %v274_v57, %v273_v58 }
 0x108   :  { %v276_v60 = vrot.slane %v275_v59, 4 }
 0x10a   :  { %v277_v61 = vadd.f32 %v276_v60, %v275_v59 }
 0x10c   :  { %v278_v62 = vrot.slane %v277_v61, 2 }
 0x10e   :  { %v279_v63 = vadd.f32 %v278_v62, %v277_v61 }
 0x110   :  { %v280_v0 = vrot.slane %v279_v63, 1 }
 0x112   :  { %v281_v1 = vadd.f32 %v280_v0, %v279_v63 }
 0x114   :  { %v283_v2 = vmul.f32 0.0078125, %v281_v1 }
 0x116   :  { %v4363_v3 = vsub.f32 %v181_v13, %v283_v2  ;;  %v4365_v4 = vsub.f32 %v184_v15, %v283_v2  ;;  %v4367_v5 = vsub.f32 %v3660_v12, %v283_v2  ;;  %v4369_v6 = vsub.f32 %v3661_v14, %v283_v2 }
 0x117   :  { %v4371_v7 = vsub.f32 %v197_v23, %v283_v2  ;;  %v4373_v8 = vsub.f32 %v200_v28, %v283_v2  ;;  %v4375_v9 = vsub.f32 %v3664_v22, %v283_v2  ;;  %v4377_v10 = vsub.f32 %v3665_v26, %v283_v2 }
 0x118   :  { %v4379_v11 = vsub.f32 %v213_v35, %v283_v2  ;;  %v4381_v16 = vsub.f32 %v216_v40, %v283_v2  ;;  %v4383_v13 = vsub.f32 %v3668_v34, %v283_v2  ;;  %v4385_v15 = vsub.f32 %v3669_v38, %v283_v2 }
 0x119   :  { %v4387_v12 = vsub.f32 %v229_v47, %v283_v2  ;;  %v4389_v14 = vsub.f32 %v232_v52, %v283_v2  ;;  %v4391_v17 = vsub.f32 %v3672_v46, %v283_v2  ;;  %v4393_v18 = vsub.f32 %v3673_v50, %v283_v2 }
 0x11a   :  { %v300_v19 = vmul.f32 %v4363_v3, %v4363_v3  ;;  %v301_v20 = vmul.f32 %v4365_v4, %v4365_v4  ;;  %v302_v21 = vmul.f32 %v4367_v5, %v4367_v5  ;;  %v303_v22 = vmul.f32 %v4369_v6, %v4369_v6 }
 0x11b   :  { %v304_v26 = vmul.f32 %v4371_v7, %v4371_v7  ;;  %v305_v29 = vmul.f32 %v4373_v8, %v4373_v8  ;;  %v306_v32 = vmul.f32 %v4375_v9, %v4375_v9  ;;  %v307_v35 = vmul.f32 %v4377_v10, %v4377_v10 }
 0x11c   :  { %v316_v23 = vsel %vm244_vm1, %v300_v19, 0.0  ;;  %v317_v24 = vsel %vm244_vm1, %v301_v20, 0.0  ;;  %v319_v27 = vsel %vm244_vm1, %v302_v21, 0.0  ;;  %v321_v30 = vsel %vm244_vm1, %v303_v22, 0.0 }
 0x11d   :  { %v318_v25 = vadd.f32 %v317_v24, %v316_v23  ;;  %v323_v33 = vsel %vm244_vm1, %v304_v26, 0.0  ;;  %v325_v36 = vsel %vm244_vm1, %v305_v29, 0.0  ;;  %v308_v38 = vmul.f32 %v4379_v11, %v4379_v11  ;;  %v4449_v29 = vld [vmem:[%s5004_s7] sm:$0xff] }
 0x11e   :  { %v327_v39 = vsel %vm244_vm1, %v306_v32, 0.0  ;;  %v309_v41 = vmul.f32 %v4381_v16, %v4381_v16  ;;  %v329_v42 = vsel %vm244_vm1, %v307_v35, 0.0  ;;  %v310_v44 = vmul.f32 %v4383_v13, %v4383_v13 }
 0x11f   :  { %v320_v28 = vadd.f32 %v319_v27, %v318_v25  ;;  %v331_v45 = vsel %vm244_vm1, %v308_v38, 0.0  ;;  %v311_v47 = vmul.f32 %v4385_v15, %v4385_v15  ;;  %v312_v50 = vmul.f32 %v4387_v12, %v4387_v12 }
 0x120   :  { %v333_v48 = vsel %vm244_vm1, %v309_v41, 0.0  ;;  %v335_v51 = vsel %vm244_vm1, %v310_v44, 0.0  ;;  %v313_v53 = vmul.f32 %v4389_v14, %v4389_v14  ;;  %v314_v56 = vmul.f32 %v4391_v17, %v4391_v17 }
 0x121   :  { %v322_v31 = vadd.f32 %v321_v30, %v320_v28  ;;  %v337_v54 = vsel %vm244_vm1, %v311_v47, 0.0  ;;  %v339_v57 = vsel %vm244_vm1, %v312_v50, 0.0  ;;  %v315_v59 = vmul.f32 %v4393_v18, %v4393_v18 }
 0x122   :  { %v341_v60 = vsel %vm244_vm1, %v313_v53, 0.0  ;;  %v343_v62 = vsel %vm244_vm1, %v314_v56, 0.0  ;;  %v372_v25 = vlaneseq }
 0x123   :  { %v324_v34 = vadd.f32 %v323_v33, %v322_v31  ;;  %v345_v0 = vsel %vm244_vm1, %v315_v59, 0.0 }
 0x124   :  { %v4443_v27 = vshrl.u32 %v372_v25, 7 }
 0x125   :  { %v326_v37 = vadd.f32 %v325_v36, %v324_v34 }
 0x126   :  { %v374_v28 = vsub.s32 0, %v4443_v27  ;;  %v394_v30 = vsub.s32 1, %v4443_v27 }
 0x127   :  { %v328_v40 = vadd.f32 %v327_v39, %v326_v37 }
 0x128   :  { %v4453_v31 = vrot.slane %v4449_v29, %v374_v28  ;;  %v4456_v33 = vrot.slane %v4449_v29, %v394_v30 }
 0x129   :  { %v330_v43 = vadd.f32 %v329_v42, %v328_v40 }
 0x12b   :  { %v332_v46 = vadd.f32 %v331_v45, %v330_v43 }
 0x12d   :  { %v334_v49 = vadd.f32 %v333_v48, %v332_v46 }
 0x12f   :  { %v336_v52 = vadd.f32 %v335_v51, %v334_v49 }
 0x131   :  { %v338_v55 = vadd.f32 %v337_v54, %v336_v52 }
 0x133   :  { %v340_v58 = vadd.f32 %v339_v57, %v338_v55 }
 0x135   :  { %v342_v61 = vadd.f32 %v341_v60, %v340_v58 }
 0x137   :  { %v344_v63 = vadd.f32 %v343_v62, %v342_v61 }
 0x139   :  { %v346_v1 = vadd.f32 %v345_v0, %v344_v63 }
 0x13b   :  { %v347_v2 = vrot.slane %v346_v1, 4 }
 0x13d   :  { %v348_v19 = vadd.f32 %v347_v2, %v346_v1 }
 0x13f   :  { %v349_v20 = vrot.slane %v348_v19, 2 }
 0x141   :  { %v350_v21 = vadd.f32 %v349_v20, %v348_v19 }
 0x143   :  { %v351_v22 = vrot.slane %v350_v21, 1 }
 0x145   :  { %v352_v23 = vadd.f32 %v351_v22, %v350_v21 }
 0x147   :  { %v353_v24 = vmul.f32 0.0078125, %v352_v23 }
 0x149   :  { %v354_v26 = vadd.f32 1e-05, %v353_v24 }
 0x14b   :  { %4237 = vrsqrt.f32 %v354_v26 }
 0x155   :  { %v4238_v32 = vpop.eup %4237 }
 0x156   :  { %v369_v34 = vmul.f32 %v4238_v32, %v4389_v14  ;;  %v356_v35 = vmul.f32 %v4238_v32, %v4363_v3  ;;  %v357_v36 = vmul.f32 %v4238_v32, %v4365_v4  ;;  %v358_v37 = vmul.f32 %v4238_v32, %v4367_v5 }
 0x157   :  { %v359_v38 = vmul.f32 %v4238_v32, %v4369_v6  ;;  %v360_v39 = vmul.f32 %v4238_v32, %v4371_v7  ;;  %v361_v40 = vmul.f32 %v4238_v32, %v4373_v8  ;;  %v362_v41 = vmul.f32 %v4238_v32, %v4375_v9 }
 0x158   :  { %v389_v42 = vmul.f32 %v4453_v31, %v369_v34  ;;  %v376_v43 = vmul.f32 %v4453_v31, %v356_v35  ;;  %v377_v14 = vmul.f32 %v4453_v31, %v357_v36  ;;  %v378_v3 = vmul.f32 %v4453_v31, %v358_v37 }
 0x159   :  { %v379_v4 = vmul.f32 %v4453_v31, %v359_v38  ;;  %v380_v5 = vmul.f32 %v4453_v31, %v360_v39  ;;  %v381_v6 = vmul.f32 %v4453_v31, %v361_v40  ;;  %v363_v7 = vmul.f32 %v4238_v32, %v4377_v10 }
 0x15a   :  { %v396_v8 = vadd.f32 %v4456_v33, %v376_v43  ;;  %v397_v9 = vadd.f32 %v4456_v33, %v377_v14  ;;  %v398_v44 = vadd.f32 %v4456_v33, %v378_v3  ;;  %v382_v45 = vmul.f32 %v4453_v31, %v362_v41 }
 0x15b   :  { %v399_v46 = vadd.f32 %v4456_v33, %v379_v4  ;;  %v400_v47 = vadd.f32 %v4456_v33, %v380_v5  ;;  %v401_v48 = vadd.f32 %v4456_v33, %v381_v6  ;;  %v383_v49 = vmul.f32 %v4453_v31, %v363_v7  ;;  %v4137_v4 = vld [vmem:[%s5003_s2 + $0x18] sm:$0xff]   ;;  %v4138_v5 = vld [vmem:[%s5003_s2 + $0x20] sm:$0xff]   ;;  %v4139_v6 = vld [vmem:[%s5003_s2 + $0x28] sm:$0xff]  }
 0x15c   :  { %v412_v50 = vmax.f32 %v396_v8, 0.0  ;;  %v413_v51 = vmax.f32 %v397_v9, 0.0  ;;  %v414_v52 = vmax.f32 %v398_v44, 0.0  ;;  %v402_v10 = vadd.f32 %v4456_v33, %v382_v45  ;;  %v4140_v7 = vld [vmem:[%s5003_s2 + $0x30] sm:$0xff]   ;;  %v4141_v8 = vld [vmem:[%s5003_s2 + $0x38] sm:$0xff]   ;;  %v4142_v9 = vld [vmem:[%s5003_s2 + $0x40] sm:$0xff]  }
 0x15d   :  { %v415_v53 = vmax.f32 %v399_v46, 0.0  ;;  %v416_v54 = vmax.f32 %v400_v47, 0.0  ;;  %v417_v55 = vmax.f32 %v401_v48, 0.0  ;;  %v403_v56 = vadd.f32 %v4456_v33, %v383_v49  ;;  %v4143_v44 = vld [vmem:[%s5003_s2 + $0x48] sm:$0xff]   ;;  %v4144_v45 = vld [vmem:[%s5003_s2 + $0x50] sm:$0xff]   ;;  %v4145_v46 = vld [vmem:[%s5003_s2 + $0x58] sm:$0xff]  }
 0x15e   :  { %v428_v57 = vpack.c.bf16 %v413_v51, %v412_v50  ;;  %v418_v58 = vmax.f32 %v402_v10, 0.0  ;;  %v364_v59 = vmul.f32 %v4238_v32, %v4379_v11  ;;  %v365_v60 = vmul.f32 %v4238_v32, %v4381_v16  ;;  %v4146_v47 = vld [vmem:[%s5003_s2 + $0x60] sm:$0xff]   ;;  %v4147_v48 = vld [vmem:[%s5003_s2 + $0x68] sm:$0xff]   ;;  %v4148_v49 = vld [vmem:[%s5003_s2 + $0x70] sm:$0xff]  }
 0x15f   :  { %v429_v61 = vpack.c.bf16 %v415_v53, %v414_v52  ;;  %v430_v62 = vpack.c.bf16 %v417_v55, %v416_v54  ;;  %v419_v63 = vmax.f32 %v403_v56, 0.0  ;;  %v366_v0 = vmul.f32 %v4238_v32, %v4383_v13  ;;  %v4149_v50 = vld [vmem:[%s5003_s2 + $0x78] sm:$0xff]   ;;  %v4150_v51 = vld [vmem:[%s5003_s2 + $0x80] sm:$0xff]   ;;  %v4151_v52 = vld [vmem:[%s5003_s2 + $0x88] sm:$0xff]  }
 0x160   :  { %3674 = vmatprep.subr.bf16.mxu1 %v428_v57  ;;  %v384_v1 = vmul.f32 %v4453_v31, %v364_v59  ;;  %v385_v2 = vmul.f32 %v4453_v31, %v365_v60  ;;  %v367_v19 = vmul.f32 %v4238_v32, %v4385_v15  ;;  %v368_v20 = vmul.f32 %v4238_v32, %v4387_v12  ;;  %v4152_v10 = vld [vmem:[%s5003_s2 + $0x90] sm:$0xff]   ;;  %v4153_v53 = vld [vmem:[%s5003_s2 + $0x98] sm:$0xff]   ;;  %v4154_v54 = vld [vmem:[%s5003_s2 + $0xa0] sm:$0xff]  }
 0x161   :  { %3675 = vmatpush3.bf16.msra.mxu1 %v428_v57  ;;  %v431_v21 = vpack.c.bf16 %v419_v63, %v418_v58  ;;  %v386_v11 = vmul.f32 %v4453_v31, %v366_v0  ;;  %v409_v16 = vadd.f32 %v4456_v33, %v389_v42  ;;  %v370_v22 = vmul.f32 %v4238_v32, %v4391_v17  ;;  %v4155_v55 = vld [vmem:[%s5003_s2 + $0xa8] sm:$0xff]   ;;  %v4156_v56 = vld [vmem:[%s5003_s2 + $0xb0] sm:$0xff]   ;;  %v4157_v57 = vld [vmem:[%s5003_s2 + $0xb8] sm:$0xff]  }
 0x162   :  { %3676 = vmatprep.subr.bf16.mxu1 %v429_v61  ;;  %v404_v13 = vadd.f32 %v4456_v33, %v384_v1  ;;  %v405_v23 = vadd.f32 %v4456_v33, %v385_v2  ;;  %v387_v24 = vmul.f32 %v4453_v31, %v367_v19  ;;  %v388_v25 = vmul.f32 %v4453_v31, %v368_v20  ;;  %v4158_v58 = vld [vmem:[%s5003_s2 + $0xc0] sm:$0xff]   ;;  %v4166_v59 = vld [vmem:[%s5005_s3 + $0x10] sm:$0xff]   ;;  %v4159_v60 = vld [vmem:[%s5003_s2 + $0xc8] sm:$0xff]  }
 0x163   :  { %v406_v15 = vadd.f32 %v4456_v33, %v386_v11  ;;  %v425_v12 = vmax.f32 %v409_v16, 0.0  ;;  %v371_v26 = vmul.f32 %v4238_v32, %v4393_v18  ;;  %v390_v28 = vmul.f32 %v4453_v31, %v370_v22  ;;  %3754 = vmatprep.subr.bf16.mxu0 %v4166_v59  ;;  %v4161_v63 = vld [vmem:[%s5003_s2 + $0xd8] sm:$0xff]   ;;  %v4162_v0 = vld [vmem:[%s5003_s2 + $0xe0] sm:$0xff]   ;;  %v4163_v2 = vld [vmem:[%s5003_s2 + $0xe8] sm:$0xff]  }
 0x164   :  { %v420_v30 = vmax.f32 %v404_v13, 0.0  ;;  %v421_v34 = vmax.f32 %v405_v23, 0.0  ;;  %v407_v17 = vadd.f32 %v4456_v33, %v387_v24  ;;  %v408_v35 = vadd.f32 %v4456_v33, %v388_v25  ;;  %3755 = vmatpush3.bf16.msra.mxu0 %v4166_v59  ;;  %v4168_v1 = vld [vmem:[%s5005_s3] sm:$0xff]   ;;  %v4164_v19 = vld [vmem:[%s5003_s2 + $0xf0] sm:$0xff]   ;;  %v4165_v20 = vld [vmem:[%s5003_s2 + $0xf8] sm:$0xff]  }
 0x165   :  { %3677 = vmatpush3.bf16.msra.mxu1 %v429_v61  ;;  %v422_v36 = vmax.f32 %v406_v15, 0.0  ;;  %v391_v37 = vmul.f32 %v4453_v31, %v371_v26  ;;  %v410_v38 = vadd.f32 %v4456_v33, %v390_v28  ;;  %v4135_v31 = vld [vmem:[%s5003_s2 + $0x8] sm:$0xff]   ;;  %v4160_v61 = vld [vmem:[%s5003_s2 + $0xd0] sm:$0xff]  }
 0x166   :  { %3678 = vmatprep.subr.bf16.mxu1 %v430_v62  ;;  %v432_v39 = vpack.c.bf16 %v421_v34, %v420_v30  ;;  %v423_v40 = vmax.f32 %v407_v17, 0.0  ;;  %v424_v41 = vmax.f32 %v408_v35, 0.0  ;;  %v4169_v30 = vld [vmem:[%s5005_s3 + $0x8] sm:$0xff]   ;;  %v4170_v35 = vld [vmem:[%s5005_s3 + $0x20] sm:$0xff]  }
 0x167   :  { %v411_v18 = vadd.f32 %v4456_v33, %v391_v37  ;;  %v426_v32 = vmax.f32 %v410_v38, 0.0  ;;  %v4136_v33 = vld [vmem:[%s5003_s2 + $0x10] sm:$0xff]  }
 0x168   :  { %v433_v42 = vpack.c.bf16 %v423_v40, %v422_v36  ;;  %v434_v43 = vpack.c.bf16 %v425_v12, %v424_v41  ;;  %v4171_v41 = vld [vmem:[%s5005_s3 + $0x28] sm:$0xff]  }
 0x169   :  { %3679 = vmatpush3.bf16.msra.mxu1 %v430_v62  ;;  %v427_v14 = vmax.f32 %v411_v18, 0.0  ;;  %v4167_v62 = vld [vmem:[%s5005_s3 + $0x18] sm:$0xff]  }
 0x16a   :  { %3680 = vmatprep.subr.bf16.mxu1 %v431_v21  ;;  %3756 = vmatprep.subr.bf16.mxu0 %v4167_v62 }
 0x16b   :  { %v435_v3 = vpack.c.bf16 %v427_v14, %v426_v32  ;;  %3757 = vmatpush3.bf16.msra.mxu0 %v4167_v62 }
 0x16c   :  { %3762 = vmatprep.subr.bf16.mxu0 %v4168_v1 }
 0x16d   :  { %3681 = vmatpush3.bf16.msra.mxu1 %v431_v21 }
 0x16e   :  { %3682 = vmatprep.subr.bf16.mxu1 %v432_v39 }
 0x171   :  { %3683 = vmatpush3.bf16.msra.mxu1 %v432_v39 }
 0x172   :  { %3684 = vmatprep.subr.bf16.mxu1 %v433_v42 }
 0x175   :  { %3685 = vmatpush3.bf16.msra.mxu1 %v433_v42 }
 0x176   :  { %3686 = vmatprep.subr.bf16.mxu1 %v434_v43 }
 0x179   :  { %3687 = vmatpush3.bf16.msra.mxu1 %v434_v43 }
 0x17a   :  { %3688 = vmatprep.subr.bf16.mxu1 %v435_v3 }
 0x17d   :  { %3689 = vmatpush3.bf16.msra.mxu1 %v435_v3  ;;  %v4172_v3 = vld [vmem:[%s5005_s3 + $0x30] sm:$0xff]  }
 0x180   :  { %3691 = vmatmul.mubr.bf16.vlgmr.msra.gmra.mrb[0].mxu1 %v4135_v31 }
 0x181   :  { %3694 = vmatprep.mubr.bf16.mxu1 %v4136_v33 }
 0x188   :  { %3695 = vmatmul.mubr.bf16.gmra.mrb[4].mxu1 %v4137_v4 }
 0x189   :  { %3698 = vmatprep.mubr.bf16.mxu1 %v4138_v5 }
 0x190   :  { %3699 = vmatmul.mubr.bf16.gmra.mrb[8].mxu1 %v4139_v6 }
 0x191   :  { %3702 = vmatprep.mubr.bf16.mxu1 %v4140_v7 }
 0x198   :  { %3703 = vmatmul.mubr.bf16.gmra.mrb[12].mxu1 %v4141_v8  ;;  %v4173_v8 = vld [vmem:[%s5005_s3 + $0x38] sm:$0xff]  }
 0x199   :  { %3706 = vmatprep.mubr.bf16.mxu1 %v4142_v9 }
 0x1a0   :  { %3707 = vmatmul.mubr.bf16.gmra.mrb[16].mxu1 %v4143_v44  ;;  %v4174_v44 = vld [vmem:[%s5005_s3 + $0x40] sm:$0xff]  }
 0x1a1   :  { %3710 = vmatprep.mubr.bf16.mxu1 %v4144_v45 }
 0x1a8   :  { %3711 = vmatmul.mubr.bf16.gmra.mrb[20].mxu1 %v4145_v46 }
 0x1a9   :  { %3714 = vmatprep.mubr.bf16.mxu1 %v4146_v47 }
 0x1b0   :  { %3715 = vmatmul.mubr.bf16.gmra.mrb[24].mxu1 %v4147_v48 }
 0x1b1   :  { %3718 = vmatprep.mubr.bf16.mxu1 %v4148_v49 }
 0x1b8   :  { %3719 = vmatmul.mubr.bf16.gmra.mrb[28].mxu1 %v4149_v50 }
 0x1b9   :  { %3722 = vmatprep.mubr.bf16.mxu1 %v4150_v51  ;;  %v4175_v51 = vld [vmem:[%s5005_s3 + $0x48] sm:$0xff]  }
 0x1c0   :  { %3723 = vmatmul.mubr.bf16.gmra.mrb[32].mxu1 %v4151_v52 }
 0x1c1   :  { %3726 = vmatprep.mubr.bf16.mxu1 %v4152_v10 }
 0x1c8   :  { %3727 = vmatmul.mubr.bf16.gmra.mrb[36].mxu1 %v4153_v53 }
 0x1c9   :  { %3730 = vmatprep.mubr.bf16.mxu1 %v4154_v54 }
 0x1d0   :  { %3731 = vmatmul.mubr.bf16.gmra.mrb[40].mxu1 %v4155_v55 }
 0x1d1   :  { %3734 = vmatprep.mubr.bf16.mxu1 %v4156_v56  ;;  %v4176_v56 = vld [vmem:[%s5005_s3 + $0x50] sm:$0xff]  }
 0x1d8   :  { %3735 = vmatmul.mubr.bf16.gmra.mrb[44].mxu1 %v4157_v57 }
 0x1d9   :  { %3738 = vmatprep.mubr.bf16.mxu1 %v4158_v58 }
 0x1e0   :  { %3739 = vmatmul.mubr.bf16.gmra.mrb[48].mxu1 %v4159_v60 }
 0x1e1   :  { %3742 = vmatprep.mubr.bf16.mxu1 %v4160_v61 }
 0x1e8   :  { %3743 = vmatmul.mubr.bf16.gmra.mrb[52].mxu1 %v4161_v63  ;;  %v4177_v63 = vld [vmem:[%s5005_s3 + $0x58] sm:$0xff]  }
 0x1e9   :  { %3746 = vmatprep.mubr.bf16.mxu1 %v4162_v0 }
 0x1f0   :  { %3747 = vmatmul.mubr.bf16.gmra.mrb[56].mxu1 %v4163_v2 }
 0x1f1   :  { %3750 = vmatprep.mubr.bf16.mxu1 %v4164_v19 }
 0x1f8   :  { %3751 = vmatmul.mubr.bf16.gmra.mrb[60].mxu1 %v4165_v20 }
 0x253   :  { %v3692_v21 = vpop.f32.mrb[0].mxu1 }
 0x254   :  { %v726_v11 = vpop.f32.mrb[1].mxu1 }
 0x255   :  { %v3693_v16 = vpop.f32.mrb[2].mxu1 }
 0x256   :  { %v982_v22 = vpack.c.bf16 %v3693_v16, %v3692_v21  ;;  %v729_v13 = vpop.f32.mrb[3].mxu1 }
 0x257   :  { %v981_v23 = vpack.c.bf16 %v729_v13, %v726_v11 }
 0x25b   :  { %v3696_v24 = vpop.f32.mrb[4].mxu1 }
 0x25c   :  { %v742_v25 = vpop.f32.mrb[5].mxu1 }
 0x25d   :  { %v3697_v15 = vpop.f32.mrb[6].mxu1 }
 0x25e   :  { %v984_v12 = vpack.c.bf16 %v3697_v15, %v3696_v24  ;;  %v745_v26 = vpop.f32.mrb[7].mxu1 }
 0x25f   :  { %v983_v28 = vpack.c.bf16 %v745_v26, %v742_v25 }
 0x261   :  { %3758 = vmatprep.mubr.msk.bf16.mxu0 %vm244_vm1, %v983_v28 }
 0x262   :  { %3759 = vmatmul.mubr.msk.bf16.vlgmr.msra.gmra.mrb[16].mxu0 %vm244_vm1, %v984_v12  ;;  %v4180_v12 = vld [vmem:[%s5005_s3 + $0x70] sm:$0xff]  }
 0x263   :  { %3766 = vmatprep.mubr.msk.bf16.mxu0 %vm244_vm1, %v981_v23  ;;  %3763 = vmatpush3.bf16.msra.mxu0 %v4168_v1  ;;  %v3700_v34 = vpop.f32.mrb[8].mxu1  ;;  %v4178_v1 = vld [vmem:[%s5005_s3 + $0x60] sm:$0xff]  }
 0x264   :  { %3764 = vmatprep.subr.bf16.mxu0 %v4169_v30  ;;  %v758_v17 = vpop.f32.mrb[9].mxu1 }
 0x265   :  { %v3701_v36 = vpop.f32.mrb[10].mxu1 }
 0x266   :  { %v986_v37 = vpack.c.bf16 %v3701_v36, %v3700_v34  ;;  %v761_v38 = vpop.f32.mrb[11].mxu1  ;;  %v4181_v36 = vld [vmem:[%s5005_s3 + $0x78] sm:$0xff]  }
 0x267   :  { %3765 = vmatpush3.bf16.msra.mxu0 %v4169_v30  ;;  %v985_v39 = vpack.c.bf16 %v761_v38, %v758_v17  ;;  %v4182_v38 = vld [vmem:[%s5005_s3 + $0x80] sm:$0xff]  }
 0x268   :  { %3770 = vmatprep.subr.bf16.mxu0 %v4170_v35 }
 0x26b   :  { %v3704_v40 = vpop.f32.mrb[12].mxu1 }
 0x26c   :  { %v774_v18 = vpop.f32.mrb[13].mxu1 }
 0x26d   :  { %v3705_v32 = vpop.f32.mrb[14].mxu1 }
 0x26e   :  { %3767 = vmatmul.mubr.msk.bf16.vlgmr.msra.gmra.mrb[16].mxu0 %vm244_vm1, %v982_v22  ;;  %v988_v42 = vpack.c.bf16 %v3705_v32, %v3704_v40  ;;  %v777_v43 = vpop.f32.mrb[15].mxu1  ;;  %v4179_v22 = vld [vmem:[%s5005_s3 + $0x68] sm:$0xff]  }
 0x26f   :  { %3771 = vmatpush3.bf16.msra.mxu0 %v4170_v35  ;;  %3774 = vmatprep.mubr.msk.bf16.mxu0 %vm244_vm1, %v985_v39  ;;  %v987_v14 = vpack.c.bf16 %v777_v43, %v774_v18  ;;  %v4183_v43 = vld [vmem:[%s5005_s3 + $0x88] sm:$0xff]  }
 0x270   :  { %3772 = vmatprep.subr.bf16.mxu0 %v4171_v41 }
 0x273   :  { %3773 = vmatpush3.bf16.msra.mxu0 %v4171_v41  ;;  %v3708_v31 = vpop.f32.mrb[16].mxu1 }
 0x274   :  { %3778 = vmatprep.subr.bf16.mxu0 %v4172_v3  ;;  %v790_v33 = vpop.f32.mrb[17].mxu1 }
 0x275   :  { %v3709_v4 = vpop.f32.mrb[18].mxu1 }
 0x276   :  { %v990_v5 = vpack.c.bf16 %v3709_v4, %v3708_v31  ;;  %v793_v6 = vpop.f32.mrb[19].mxu1 }
 0x277   :  { %v989_v7 = vpack.c.bf16 %v793_v6, %v790_v33 }
 0x27a   :  { %3775 = vmatmul.mubr.msk.bf16.vlgmr.msra.gmra.mrb[16].mxu0 %vm244_vm1, %v986_v37 }
 0x27b   :  { %3779 = vmatpush3.bf16.msra.mxu0 %v4172_v3  ;;  %3782 = vmatprep.mubr.msk.bf16.mxu0 %vm244_vm1, %v987_v14  ;;  %v3712_v9 = vpop.f32.mrb[20].mxu1 }
 0x27c   :  { %3780 = vmatprep.subr.bf16.mxu0 %v4173_v8  ;;  %v806_v45 = vpop.f32.mrb[21].mxu1 }
 0x27d   :  { %v3713_v46 = vpop.f32.mrb[22].mxu1 }
 0x27e   :  { %v992_v47 = vpack.c.bf16 %v3713_v46, %v3712_v9  ;;  %v809_v48 = vpop.f32.mrb[23].mxu1  ;;  %v4185_v46 = vld [vmem:[%s5005_s3 + $0x98] sm:$0xff]  }
 0x27f   :  { %3781 = vmatpush3.bf16.msra.mxu0 %v4173_v8  ;;  %v991_v49 = vpack.c.bf16 %v809_v48, %v806_v45  ;;  %v4186_v48 = vld [vmem:[%s5005_s3 + $0xa0] sm:$0xff]  }
 0x280   :  { %3786 = vmatprep.subr.bf16.mxu0 %v4174_v44 }
 0x283   :  { %v3716_v50 = vpop.f32.mrb[24].mxu1 }
 0x284   :  { %v822_v52 = vpop.f32.mrb[25].mxu1 }
 0x285   :  { %v3717_v10 = vpop.f32.mrb[26].mxu1 }
 0x286   :  { %3783 = vmatmul.mubr.msk.bf16.vlgmr.msra.gmra.mrb[16].mxu0 %vm244_vm1, %v988_v42  ;;  %v994_v53 = vpack.c.bf16 %v3717_v10, %v3716_v50  ;;  %v825_v54 = vpop.f32.mrb[27].mxu1 }
 0x287   :  { %3787 = vmatpush3.bf16.msra.mxu0 %v4174_v44  ;;  %3790 = vmatprep.mubr.msk.bf16.mxu0 %vm244_vm1, %v989_v7  ;;  %v993_v55 = vpack.c.bf16 %v825_v54, %v822_v52  ;;  %v4187_v54 = vld [vmem:[%s5005_s3 + $0xa8] sm:$0xff]  }
 0x288   :  { %3788 = vmatprep.subr.bf16.mxu0 %v4175_v51 }
 0x28b   :  { %3789 = vmatpush3.bf16.msra.mxu0 %v4175_v51  ;;  %v3720_v57 = vpop.f32.mrb[28].mxu1 }
 0x28c   :  { %3794 = vmatprep.subr.bf16.mxu0 %v4176_v56  ;;  %v838_v58 = vpop.f32.mrb[29].mxu1 }
 0x28d   :  { %v3721_v59 = vpop.f32.mrb[30].mxu1 }
 0x28e   :  { %v996_v60 = vpack.c.bf16 %v3721_v59, %v3720_v57  ;;  %v841_v61 = vpop.f32.mrb[31].mxu1 }
 0x28f   :  { %v995_v62 = vpack.c.bf16 %v841_v61, %v838_v58  ;;  %v4189_v61 = vld [vmem:[%s5005_s3 + $0xb8] sm:$0xff]  }
 0x292   :  { %3791 = vmatmul.mubr.msk.bf16.vlgmr.msra.gmra.mrb[16].mxu0 %vm244_vm1, %v990_v5  ;;  %v4184_v5 = vld [vmem:[%s5005_s3 + $0x90] sm:$0xff]  }
 0x293   :  { %3795 = vmatpush3.bf16.msra.mxu0 %v4176_v56  ;;  %3798 = vmatprep.mubr.msk.bf16.mxu0 %vm244_vm1, %v991_v49  ;;  %v4646_v0 = vpop.f32.mrb[32].mxu1 }
 0x294   :  { %3796 = vmatprep.subr.bf16.mxu0 %v4177_v63  ;;  %v854_v2 = vpop.f32.mrb[33].mxu1 }
 0x295   :  { %v3725_v19 = vpop.f32.mrb[34].mxu1 }
 0x296   :  { %v998_v20 = vpack.c.bf16 %v3725_v19, %v4646_v0  ;;  %v857_v21 = vpop.f32.mrb[35].mxu1  ;;  %v4192_v0 = vld [vmem:[%s5005_s3 + $0xd0] sm:$0xff]   ;;  %v4195_v19 = vld [vmem:[%s5005_s3 + $0xe8] sm:$0xff]  }
 0x297   :  { %3797 = vmatpush3.bf16.msra.mxu0 %v4177_v63  ;;  %v997_v11 = vpack.c.bf16 %v857_v21, %v854_v2  ;;  %v4191_v63 = vld [vmem:[%s5005_s3 + $0xc8] sm:$0xff]   ;;  %v4194_v2 = vld [vmem:[%s5005_s3 + $0xe0] sm:$0xff]   ;;  %v4197_v21 = vld [vmem:[%s5005_s3 + $0xf8] sm:$0xff]  }
 0x298   :  { %3802 = vmatprep.subr.bf16.mxu0 %v4178_v1 }
 0x29b   :  { %v4652_v16 = vpop.f32.mrb[36].mxu1 }
 0x29c   :  { %v870_v13 = vpop.f32.mrb[37].mxu1 }
 0x29d   :  { %v4657_v23 = vpop.f32.mrb[38].mxu1 }
 0x29e   :  { %3799 = vmatmul.mubr.msk.bf16.vlgmr.msra.gmra.mrb[16].mxu0 %vm244_vm1, %v992_v47  ;;  %v1000_v24 = vpack.c.bf16 %v4657_v23, %v4652_v16  ;;  %v873_v25 = vpop.f32.mrb[39].mxu1 }
 0x29f   :  { %3803 = vmatpush3.bf16.msra.mxu0 %v4178_v1  ;;  %3806 = vmatprep.mubr.msk.bf16.mxu0 %vm244_vm1, %v993_v55  ;;  %v999_v15 = vpack.c.bf16 %v873_v25, %v870_v13  ;;  %v4193_v1 = vld [vmem:[%s5005_s3 + $0xd8] sm:$0xff]  }
 0x2a0   :  { %3804 = vmatprep.subr.bf16.mxu0 %v4179_v22 }
 0x2a3   :  { %3805 = vmatpush3.bf16.msra.mxu0 %v4179_v22  ;;  %v4666_v26 = vpop.f32.mrb[40].mxu1 }
 0x2a4   :  { %3810 = vmatprep.subr.bf16.mxu0 %v4180_v12  ;;  %v886_v28 = vpop.f32.mrb[41].mxu1 }
 0x2a5   :  { %v4668_v30 = vpop.f32.mrb[42].mxu1 }
 0x2a6   :  { %v1002_v34 = vpack.c.bf16 %v4668_v30, %v4666_v26  ;;  %v889_v17 = vpop.f32.mrb[43].mxu1 }
 0x2a7   :  { %v1001_v35 = vpack.c.bf16 %v889_v17, %v886_v28 }
 0x2aa   :  { %3807 = vmatmul.mubr.msk.bf16.vlgmr.msra.gmra.mrb[16].mxu0 %vm244_vm1, %v994_v53 }
 0x2ab   :  { %3811 = vmatpush3.bf16.msra.mxu0 %v4180_v12  ;;  %3814 = vmatprep.mubr.msk.bf16.mxu0 %vm244_vm1, %v995_v62  ;;  %v4677_v37 = vpop.f32.mrb[44].mxu1  ;;  %v4190_v62 = vld [vmem:[%s5005_s3 + $0xc0] sm:$0xff]  }
 0x2ac   :  { %3812 = vmatprep.subr.bf16.mxu0 %v4181_v36  ;;  %v902_v39 = vpop.f32.mrb[45].mxu1 }
 0x2ad   :  { %v4682_v40 = vpop.f32.mrb[46].mxu1 }
 0x2ae   :  { %v1004_v41 = vpack.c.bf16 %v4682_v40, %v4677_v37  ;;  %v905_v18 = vpop.f32.mrb[47].mxu1 }
 0x2af   :  { %3813 = vmatpush3.bf16.msra.mxu0 %v4181_v36  ;;  %v1003_v32 = vpack.c.bf16 %v905_v18, %v902_v39 }
 0x2b0   :  { %3818 = vmatprep.subr.bf16.mxu0 %v4182_v38 }
 0x2b3   :  { %v4686_v42 = vpop.f32.mrb[48].mxu1 }
 0x2b4   :  { %v918_v14 = vpop.f32.mrb[49].mxu1 }
 0x2b5   :  { %v4691_v3 = vpop.f32.mrb[50].mxu1 }
 0x2b6   :  { %3815 = vmatmul.mubr.msk.bf16.vlgmr.msra.gmra.mrb[16].mxu0 %vm244_vm1, %v996_v60  ;;  %v1006_v31 = vpack.c.bf16 %v4691_v3, %v4686_v42  ;;  %v921_v33 = vpop.f32.mrb[51].mxu1  ;;  %v4188_v60 = vld [vmem:[%s5005_s3 + $0xb0] sm:$0xff]  }
 0x2b7   :  { %3819 = vmatpush3.bf16.msra.mxu0 %v4182_v38  ;;  %3822 = vmatprep.mubr.msk.bf16.mxu0 %vm244_vm1, %v997_v11  ;;  %v1005_v4 = vpack.c.bf16 %v921_v33, %v918_v14  ;;  %v4246_v11 = vmov 0.0  }
 0x2b8   :  { %3820 = vmatprep.subr.bf16.mxu0 %v4183_v43  ;;  %3882 = vmatprep.subr.bf16.mxu1 %v4246_v11 }
 0x2b9   :  { %3886 = vmatprep.mubr.msk.bf16.mxu1 %vm4247_vm2, %v4246_v11 }
 0x2bb   :  { %3821 = vmatpush3.bf16.msra.mxu0 %v4183_v43  ;;  %v3744_v6 = vpop.f32.mrb[52].mxu1 }
 0x2bc   :  { %3826 = vmatprep.subr.bf16.mxu0 %v4184_v5  ;;  %v934_v7 = vpop.f32.mrb[53].mxu1 }
 0x2bd   :  { %v3745_v8 = vpop.f32.mrb[54].mxu1 }
 0x2be   :  { %v1008_v9 = vpack.c.bf16 %v3745_v8, %v3744_v6  ;;  %v937_v44 = vpop.f32.mrb[55].mxu1 }
 0x2bf   :  { %v1007_v45 = vpack.c.bf16 %v937_v44, %v934_v7 }
 0x2c2   :  { %3823 = vmatmul.mubr.msk.bf16.vlgmr.msra.gmra.mrb[16].mxu0 %vm244_vm1, %v998_v20  ;;  %v4196_v20 = vld [vmem:[%s5005_s3 + $0xf0] sm:$0xff]  }
 0x2c3   :  { %3827 = vmatpush3.bf16.msra.mxu0 %v4184_v5  ;;  %3830 = vmatprep.mubr.msk.bf16.mxu0 %vm244_vm1, %v999_v15  ;;  %v3748_v47 = vpop.f32.mrb[56].mxu1 }
 0x2c4   :  { %3828 = vmatprep.subr.bf16.mxu0 %v4185_v46  ;;  %v950_v49 = vpop.f32.mrb[57].mxu1 }
 0x2c5   :  { %v3749_v50 = vpop.f32.mrb[58].mxu1 }
 0x2c6   :  { %v1010_v51 = vpack.c.bf16 %v3749_v50, %v3748_v47  ;;  %v953_v52 = vpop.f32.mrb[59].mxu1 }
 0x2c7   :  { %3829 = vmatpush3.bf16.msra.mxu0 %v4185_v46  ;;  %v1009_v10 = vpack.c.bf16 %v953_v52, %v950_v49  ;;  %v2258_v52 = vsub.s32 3, %v4443_v27 }
 0x2c8   :  { %3834 = vmatprep.subr.bf16.mxu0 %v4186_v48 }
 0x2cb   :  { %v3752_v53 = vpop.f32.mrb[60].mxu1 }
 0x2cc   :  { %v966_v55 = vpop.f32.mrb[61].mxu1 }
 0x2cd   :  { %v3753_v56 = vpop.f32.mrb[62].mxu1 }
 0x2ce   :  { %3831 = vmatmul.mubr.msk.bf16.vlgmr.msra.gmra.mrb[16].mxu0 %vm244_vm1, %v1000_v24  ;;  %v1012_v57 = vpack.c.bf16 %v3753_v56, %v3752_v53  ;;  %v969_v58 = vpop.f32.mrb[63].mxu1 }
 0x2cf   :  { %3835 = vmatpush3.bf16.msra.mxu0 %v4186_v48  ;;  %3838 = vmatprep.mubr.msk.bf16.mxu0 %vm244_vm1, %v1001_v35  ;;  %v1011_v59 = vpack.c.bf16 %v969_v58, %v966_v55 }
 0x2d0   :  { %3836 = vmatprep.subr.bf16.mxu0 %v4187_v54 }
 0x2d3   :  { %3837 = vmatpush3.bf16.msra.mxu0 %v4187_v54  ;;  %v2259_v54 = vrot.slane %v4449_v29, %v2258_v52  ;;  %v4212_v52 = vld [vmem:[%s5007_s5 + $0x48] sm:$0xff]  }
 0x2d4   :  { %3842 = vmatprep.subr.bf16.mxu0 %v4188_v60 }
 0x2da   :  { %3839 = vmatmul.mubr.msk.bf16.vlgmr.msra.gmra.mrb[16].mxu0 %vm244_vm1, %v1002_v34 }
 0x2db   :  { %3843 = vmatpush3.bf16.msra.mxu0 %v4188_v60  ;;  %3846 = vmatprep.mubr.msk.bf16.mxu0 %vm244_vm1, %v1003_v32 }
 0x2dc   :  { %3844 = vmatprep.subr.bf16.mxu0 %v4189_v61 }
 0x2df   :  { %3845 = vmatpush3.bf16.msra.mxu0 %v4189_v61 }
 0x2e0   :  { %3850 = vmatprep.subr.bf16.mxu0 %v4190_v62 }
 0x2e6   :  { %3847 = vmatmul.mubr.msk.bf16.vlgmr.msra.gmra.mrb[16].mxu0 %vm244_vm1, %v1004_v41 }
 0x2e7   :  { %3851 = vmatpush3.bf16.msra.mxu0 %v4190_v62  ;;  %3854 = vmatprep.mubr.msk.bf16.mxu0 %vm244_vm1, %v1005_v4 }
 0x2e8   :  { %3852 = vmatprep.subr.bf16.mxu0 %v4191_v63 }
 0x2eb   :  { %3853 = vmatpush3.bf16.msra.mxu0 %v4191_v63 }
 0x2ec   :  { %3858 = vmatprep.subr.bf16.mxu0 %v4192_v0 }
 0x2f2   :  { %3855 = vmatmul.mubr.msk.bf16.vlgmr.msra.gmra.mrb[16].mxu0 %vm244_vm1, %v1006_v31 }
 0x2f3   :  { %3859 = vmatpush3.bf16.msra.mxu0 %v4192_v0  ;;  %3862 = vmatprep.mubr.msk.bf16.mxu0 %vm244_vm1, %v1007_v45 }
 0x2f4   :  { %3860 = vmatprep.subr.bf16.mxu0 %v4193_v1 }
 0x2f7   :  { %3861 = vmatpush3.bf16.msra.mxu0 %v4193_v1 }
 0x2f8   :  { %3866 = vmatprep.subr.bf16.mxu0 %v4194_v2 }
 0x2fe   :  { %3863 = vmatmul.mubr.msk.bf16.vlgmr.msra.gmra.mrb[16].mxu0 %vm244_vm1, %v1008_v9 }
 0x2ff   :  { %3867 = vmatpush3.bf16.msra.mxu0 %v4194_v2  ;;  %3870 = vmatprep.mubr.msk.bf16.mxu0 %vm244_vm1, %v1009_v10 }
 0x300   :  { %3868 = vmatprep.subr.bf16.mxu0 %v4195_v19 }
 0x303   :  { %3869 = vmatpush3.bf16.msra.mxu0 %v4195_v19 }
 0x304   :  { %3874 = vmatprep.subr.bf16.mxu0 %v4196_v20 }
 0x30a   :  { %3871 = vmatmul.mubr.msk.bf16.vlgmr.msra.gmra.mrb[16].mxu0 %vm244_vm1, %v1010_v51  ;;  %v2250_v51 = vsub.s32 2, %v4443_v27 }
 0x30b   :  { %3875 = vmatpush3.bf16.msra.mxu0 %v4196_v20  ;;  %3878 = vmatprep.mubr.msk.bf16.mxu0 %vm244_vm1, %v1011_v59 }
 0x30c   :  { %3876 = vmatprep.subr.bf16.mxu0 %v4197_v21  ;;  %v2251_v10 = vrot.slane %v4449_v29, %v2250_v51  ;;  %v4198_v29 = vld [vmem:[%s5006_s4] sm:$0xff]  }
 0x30f   :  { %3877 = vmatpush3.bf16.msra.mxu0 %v4197_v21 }
 0x310   :  { %3906 = vmatprep.subr.bf16.mxu0 %v4246_v11 }
 0x316   :  { %3879 = vmatmul.mubr.msk.bf16.vlgmr.msra.gmra.mrb[16].mxu0 %vm244_vm1, %v1012_v57 }
 0x317   :  { %3910 = vmatprep.mubr.msk.bf16.mxu0 %vm4247_vm2, %v4246_v11 }
 0x3e9   :  { %v3880_v16 = vpop.f32.mrb[16].mxu0 }
 0x3ea   :  { %v2186_v22 = vpop.f32.mrb[17].mxu0  ;;  %v2208_v12 = vsel %vm244_vm1, %v3880_v16, 0.0 }
 0x3eb   :  { %v3881_v13 = vpop.f32.mrb[18].mxu0  ;;  %v2205_v24 = vsel %vm244_vm1, %v2186_v22, 0.0 }
 0x3ec   :  { %v2189_v23 = vpop.f32.mrb[19].mxu0  ;;  %v2210_v28 = vsel %vm244_vm1, %v3881_v13, 0.0 }
 0x3ed   :  { %v2206_v25 = vsel %vm244_vm1, %v2189_v23, 0.0 }
 0x3ee   :  { %v2207_v15 = vadd.f32 %v2206_v25, %v2205_v24  ;;  %v4200_v24 = vld [vmem:[%s5006_s4 + $0x10] sm:$0xff]   ;;  %v4201_v25 = vld [vmem:[%s5006_s4 + $0x18] sm:$0xff]  }
 0x3f0   :  { %v2209_v26 = vadd.f32 %v2208_v12, %v2207_v15  ;;  %v4202_v15 = vld [vmem:[%s5006_s4 + $0x20] ss:$0 sps:$4 sm:$0xff]   ;;  %v4203_v12 = vld [vmem:[%s5007_s5 + $0x10] sm:$0xff]  }
 0x3f1   :  { %3907 = vmatpush3.bf16.msra.mxu0 %v4203_v12 }
 0x3f2   :  { %v2211_v30 = vadd.f32 %v2210_v28, %v2209_v26  ;;  %3908 = vmatprep.subr.bf16.mxu0 %v4246_v11  ;;  %v4204_v26 = vld [vmem:[%s5007_s5 + $0x18] sm:$0xff]  }
 0x3f4   :  { %v2212_v34 = vrot.slane %v2211_v30, 4 }
 0x3f5   :  { %3909 = vmatpush3.bf16.msra.mxu0 %v4204_v26 }
 0x3f6   :  { %v2213_v17 = vadd.f32 %v2212_v34, %v2211_v30  ;;  %3914 = vmatprep.subr.bf16.mxu0 %v4246_v11 }
 0x3f8   :  { %v2214_v35 = vrot.slane %v2213_v17, 2 }
 0x3fa   :  { %v2215_v36 = vadd.f32 %v2214_v35, %v2213_v17 }
 0x3fc   :  { %v2216_v37 = vrot.slane %v2215_v36, 1 }
 0x3fe   :  { %v2217_v38 = vadd.f32 %v2216_v37, %v2215_v36  ;;  %v4205_v36 = vld [vmem:[%s5007_s5] sm:$0xff]  }
 0x400   :  { %v2219_v39 = vmul.f32 0.03125, %v2217_v38  ;;  %v4206_v38 = vld [vmem:[%s5007_s5 + $0x8] sm:$0xff]  }
 0x402   :  { %v2220_v40 = vsub.f32 %v2186_v22, %v2219_v39  ;;  %v2221_v41 = vsub.f32 %v2189_v23, %v2219_v39  ;;  %v2222_v18 = vsub.f32 %v3880_v16, %v2219_v39  ;;  %v2223_v32 = vsub.f32 %v3881_v13, %v2219_v39  ;;  %v4199_v23 = vld [vmem:[%s5006_s4 + $0x8] sm:$0xff]  }
 0x404   :  { %v2224_v42 = vmul.f32 %v2220_v40, %v2220_v40  ;;  %v2225_v43 = vmul.f32 %v2221_v41, %v2221_v41  ;;  %v2226_v14 = vmul.f32 %v2222_v18, %v2222_v18  ;;  %v2227_v3 = vmul.f32 %v2223_v32, %v2223_v32 }
 0x406   :  { %v2228_v31 = vsel %vm244_vm1, %v2224_v42, 0.0  ;;  %v2229_v33 = vsel %vm244_vm1, %v2225_v43, 0.0  ;;  %v2231_v5 = vsel %vm244_vm1, %v2226_v14, 0.0  ;;  %v2233_v7 = vsel %vm244_vm1, %v2227_v3, 0.0  ;;  %v4207_v42 = vld [vmem:[%s5007_s5 + $0x20] sm:$0xff]  }
 0x407   :  { %v2230_v4 = vadd.f32 %v2229_v33, %v2228_v31 }
 0x409   :  { %v2232_v6 = vadd.f32 %v2231_v5, %v2230_v4  ;;  %v4208_v4 = vld [vmem:[%s5007_s5 + $0x28] sm:$0xff]  }
 0x40b   :  { %v2234_v8 = vadd.f32 %v2233_v7, %v2232_v6 }
 0x40d   :  { %v2235_v9 = vrot.slane %v2234_v8, 4 }
 0x40f   :  { %v2236_v44 = vadd.f32 %v2235_v9, %v2234_v8 }
 0x411   :  { %v2237_v45 = vrot.slane %v2236_v44, 2 }
 0x413   :  { %v2238_v46 = vadd.f32 %v2237_v45, %v2236_v44  ;;  %v4209_v44 = vld [vmem:[%s5007_s5 + $0x30] sm:$0xff]   ;;  %v4210_v45 = vld [vmem:[%s5007_s5 + $0x38] sm:$0xff]  }
 0x415   :  { %v2239_v47 = vrot.slane %v2238_v46, 1 }
 0x417   :  { %v2240_v48 = vadd.f32 %v2239_v47, %v2238_v46 }
 0x419   :  { %v2241_v49 = vmul.f32 0.03125, %v2240_v48 }
 0x41b   :  { %v2242_v50 = vadd.f32 1e-05, %v2241_v49 }
 0x41d   :  { %4239 = vrsqrt.f32 %v2242_v50  ;;  %v4211_v50 = vld [vmem:[%s5007_s5 + $0x40] sm:$0xff]  }
 0x427   :  { %v4240_v53 = vpop.eup %4239 }
 0x428   :  { %v2244_v55 = vmul.f32 %v4240_v53, %v2220_v40  ;;  %v2245_v56 = vmul.f32 %v4240_v53, %v2221_v41  ;;  %v2246_v57 = vmul.f32 %v4240_v53, %v2222_v18  ;;  %v2247_v58 = vmul.f32 %v4240_v53, %v2223_v32  ;;  %v4214_v53 = vld [vmem:[%s5007_s5 + $0x58] sm:$0xff]  }
 0x42a   :  { %v2253_v59 = vmul.f32 %v2251_v10, %v2245_v56  ;;  %v2252_v60 = vmul.f32 %v2251_v10, %v2244_v55  ;;  %v2254_v61 = vmul.f32 %v2251_v10, %v2246_v57  ;;  %v2255_v62 = vmul.f32 %v2251_v10, %v2247_v58  ;;  %v4213_v10 = vld [vmem:[%s5007_s5 + $0x50] sm:$0xff]   ;;  %v4216_v56 = vld [vmem:[%s5007_s5 + $0x68] sm:$0xff]   ;;  %v4218_v58 = vld [vmem:[%s5007_s5 + $0x78] sm:$0xff]  }
 0x42b   :  { %v4217_v57 = vld [vmem:[%s5007_s5 + $0x70] sm:$0xff]  }
 0x42c   :  { %v2261_v63 = vadd.f32 %v2259_v54, %v2253_v59  ;;  %v2260_v0 = vadd.f32 %v2259_v54, %v2252_v60  ;;  %v2262_v1 = vadd.f32 %v2259_v54, %v2254_v61  ;;  %v2263_v2 = vadd.f32 %v2259_v54, %v2255_v62  ;;  %v4215_v54 = vld [vmem:[%s5007_s5 + $0x60] sm:$0xff]   ;;  %v4220_v61 = vld [vmem:[%s5007_s5 + $0x88] sm:$0xff]  }
 0x42d   :  { %v4219_v59 = vld [vmem:[%s5007_s5 + $0x80] sm:$0xff]  }
 0x42e   :  { %v2265_v19 = vmax.f32 %v2261_v63, 0.0  ;;  %v2264_v20 = vmax.f32 %v2260_v0, 0.0  ;;  %v2266_v21 = vmax.f32 %v2262_v1, 0.0  ;;  %v2267_v16 = vmax.f32 %v2263_v2, 0.0  ;;  %v4221_v63 = vld [vmem:[%s5008_s6 + $0x20] sm:$0xff]   ;;  %v4222_v0 = vld [vmem:[%s5008_s6 + $0x28] sm:$0xff]  }
 0x42f   :  { %v4223_v1 = vld [vmem:[%s5008_s6 + $0x30] sm:$0xff]   ;;  %v4224_v2 = vld [vmem:[%s5008_s6 + $0x38] sm:$0xff]  }
 0x430   :  { %v2268_v22 = vpack.c.bf16 %v2265_v19, %v2264_v20  ;;  %v2269_v13 = vpack.c.bf16 %v2267_v16, %v2266_v21 }
 0x432   :  { %3883 = vmatpush3.bf16.msra.mxu1 %v2268_v22 }
 0x433   :  { %3884 = vmatprep.subr.bf16.mxu1 %v4246_v11 }
 0x436   :  { %3885 = vmatpush3.bf16.msra.mxu1 %v2269_v13 }
 0x437   :  { %3978 = vmatprep.subr.bf16.mxu1 %v4246_v11 }
 0x439   :  { %3887 = vmatmul.mubr.msk.bf16.vlgmr.msra.gmra.mrb[64].mxu1 %vm244_vm1, %v4198_v29 }
 0x43a   :  { %3890 = vmatprep.mubr.msk.bf16.mxu1 %vm4247_vm2, %v4246_v11  ;;  %3979 = vmatpush3.bf16.msra.mxu1 %v4221_v63 }
 0x43b   :  { %3980 = vmatprep.subr.bf16.mxu1 %v4246_v11 }
 0x43e   :  { %3981 = vmatpush3.bf16.msra.mxu1 %v4222_v0 }
 0x43f   :  { %3982 = vmatprep.subr.bf16.mxu1 %v4246_v11 }
 0x441   :  { %3891 = vmatmul.mubr.msk.bf16.gmra.mrb[68].mxu1 %vm244_vm1, %v4199_v23 }
 0x442   :  { %3894 = vmatprep.mubr.msk.bf16.mxu1 %vm4247_vm2, %v4246_v11  ;;  %3983 = vmatpush3.bf16.msra.mxu1 %v4223_v1 }
 0x443   :  { %3984 = vmatprep.subr.bf16.mxu1 %v4246_v11 }
 0x446   :  { %3985 = vmatpush3.bf16.msra.mxu1 %v4224_v2 }
 0x447   :  { %3990 = vmatprep.subr.bf16.mxu1 %v4246_v11 }
 0x449   :  { %3895 = vmatmul.mubr.msk.bf16.gmra.mrb[72].mxu1 %vm244_vm1, %v4200_v24 }
 0x44a   :  { %3898 = vmatprep.mubr.msk.bf16.mxu1 %vm4247_vm2, %v4246_v11 }
 0x451   :  { %3899 = vmatmul.mubr.msk.bf16.gmra.mrb[76].mxu1 %vm244_vm1, %v4201_v25 }
 0x452   :  { %3902 = vmatprep.mubr.msk.bf16.mxu1 %vm4247_vm2, %v4246_v11 }
 0x459   :  { %3903 = vmatmul.mubr.msk.bf16.gmra.mrb[80].mxu1 %vm244_vm1, %v4202_v15 }
 0x45a   :  { %3986 = vmatprep.mubr.msk.bf16.mxu1 %vm4247_vm2, %v4246_v11 }
 0x50c   :  { %v2351_v28 = vpop.f32.mrb[64].mxu1 }
 0x50d   :  { %v3888_v30 = vpop.f32.mrb[65].mxu1 }
 0x50e   :  { %v2354_v34 = vpop.f32.mrb[66].mxu1 }
 0x50f   :  { %v2389_v17 = vpack.c.bf16 %v2354_v34, %v2351_v28  ;;  %v3889_v35 = vpop.f32.mrb[67].mxu1 }
 0x511   :  { %v2403_v37 = vrot.slane %v2389_v17, 4 }
 0x513   :  { %3911 = vmatmul.mubr.msk.bf16.vlgmr.msra.gmra.mrb[20].mxu0 %vm244_vm1, %v2403_v37 }
 0x514   :  { %3915 = vmatpush3.bf16.msra.mxu0 %v4205_v36  ;;  %3918 = vmatprep.mubr.msk.bf16.mxu0 %vm4247_vm2, %v4246_v11  ;;  %v2359_v39 = vpop.f32.mrb[68].mxu1 }
 0x515   :  { %3916 = vmatprep.subr.bf16.mxu0 %v4246_v11  ;;  %v3892_v40 = vpop.f32.mrb[69].mxu1 }
 0x516   :  { %v2362_v41 = vpop.f32.mrb[70].mxu1 }
 0x517   :  { %v2390_v18 = vpack.c.bf16 %v2362_v41, %v2359_v39  ;;  %v3893_v32 = vpop.f32.mrb[71].mxu1  ;;  %v2964_v41 = vsub.s32 4, %v4443_v27 }
 0x518   :  { %3917 = vmatpush3.bf16.msra.mxu0 %v4206_v38  ;;  %v4929_v32 = vld [vmem:[%s5004_s7] sm:$0xff] }
 0x519   :  { %3922 = vmatprep.subr.bf16.mxu0 %v4246_v11  ;;  %v2579_v51 = vrot.slane %v2390_v18, 4 }
 0x51c   :  { %v2367_v43 = vpop.f32.mrb[72].mxu1 }
 0x51d   :  { %v3896_v14 = vpop.f32.mrb[73].mxu1 }
 0x51e   :  { %v2370_v3 = vpop.f32.mrb[74].mxu1 }
 0x51f   :  { %3919 = vmatmul.mubr.msk.bf16.vlgmr.msra.gmra.mrb[20].mxu0 %vm244_vm1, %v2389_v17  ;;  %v2391_v31 = vpack.c.bf16 %v2370_v3, %v2367_v43  ;;  %v3897_v33 = vpop.f32.mrb[75].mxu1 }
 0x520   :  { %3923 = vmatpush3.bf16.msra.mxu0 %v4207_v42  ;;  %3926 = vmatprep.mubr.msk.bf16.mxu0 %vm4247_vm2, %v4246_v11  ;;  %v2965_v42 = vrot.slane %v4929_v32, %v2964_v41 }
 0x521   :  { %3924 = vmatprep.subr.bf16.mxu0 %v4246_v11  ;;  %v2701_v55 = vrot.slane %v2391_v31, 4 }
 0x524   :  { %3925 = vmatpush3.bf16.msra.mxu0 %v4208_v4  ;;  %v2375_v5 = vpop.f32.mrb[76].mxu1 }
 0x525   :  { %3930 = vmatprep.subr.bf16.mxu0 %v4246_v11  ;;  %v3900_v6 = vpop.f32.mrb[77].mxu1 }
 0x526   :  { %v2378_v7 = vpop.f32.mrb[78].mxu1  ;;  %v4225_v6 = vld [vmem:[%s5008_s6] sm:$0xff]  }
 0x527   :  { %v2392_v8 = vpack.c.bf16 %v2378_v7, %v2375_v5  ;;  %v3901_v9 = vpop.f32.mrb[79].mxu1 }
 0x528   :  { %v4227_v9 = vld [vmem:[%s5008_s6 + $0x10] sm:$0xff]  }
 0x529   :  { %v2823_v60 = vrot.slane %v2392_v8, 4 }
 0x52b   :  { %3927 = vmatmul.mubr.msk.bf16.vlgmr.msra.gmra.mrb[20].mxu0 %vm244_vm1, %v2390_v18  ;;  %v2969_v18 = vsub.s32 5, %v4443_v27 }
 0x52c   :  { %3931 = vmatpush3.bf16.msra.mxu0 %v4209_v44  ;;  %3934 = vmatprep.mubr.msk.bf16.mxu0 %vm4247_vm2, %v4246_v11  ;;  %v2383_v46 = vpop.f32.mrb[80].mxu1  ;;  %v4228_v44 = vld [vmem:[%s5008_s6 + $0x18] sm:$0xff]  }
 0x52d   :  { %3932 = vmatprep.subr.bf16.mxu0 %v4246_v11  ;;  %v3904_v47 = vpop.f32.mrb[81].mxu1  ;;  %v2393_v62 = vpack.c.bf16 %v2383_v46, %v2383_v46  ;;  %v2970_v3 = vrot.slane %v4929_v32, %v2969_v18  ;;  %v4230_v46 = vld [vmem:[%s5008_s6 + $0x48] sm:$0xff]  }
 0x52e   :  { %v2386_v48 = vpop.f32.mrb[82].mxu1  ;;  %v4231_v47 = vld [vmem:[%s5008_s6 + $0x50] sm:$0xff]  }
 0x52f   :  { %v3905_v49 = vpop.f32.mrb[83].mxu1  ;;  %v4232_v48 = vld [vmem:[%s5008_s6 + $0x58] sm:$0xff]  }
 0x530   :  { %3933 = vmatpush3.bf16.msra.mxu0 %v4210_v45  ;;  %v4229_v45 = vld [vmem:[%s5008_s6 + $0x40] sm:$0xff]  }
 0x531   :  { %3938 = vmatprep.subr.bf16.mxu0 %v4246_v11  ;;  %v4233_v49 = vld [vmem:[%s5008_s6 + $0x60] sm:$0xff]  }
 0x537   :  { %3935 = vmatmul.mubr.msk.bf16.vlgmr.msra.gmra.mrb[20].mxu0 %vm244_vm1, %v2579_v51  ;;  %v4234_v51 = vld [vmem:[%s5008_s6 + $0x68] sm:$0xff]  }
 0x538   :  { %3939 = vmatpush3.bf16.msra.mxu0 %v4211_v50  ;;  %3942 = vmatprep.mubr.msk.bf16.mxu0 %vm4247_vm2, %v4246_v11 }
 0x539   :  { %3940 = vmatprep.subr.bf16.mxu0 %v4246_v11 }
 0x53c   :  { %3941 = vmatpush3.bf16.msra.mxu0 %v4212_v52  ;;  %v4235_v52 = vld [vmem:[%s5008_s6 + $0x70] sm:$0xff]  }
 0x53d   :  { %3946 = vmatprep.subr.bf16.mxu0 %v4246_v11 }
 0x543   :  { %3943 = vmatmul.mubr.msk.bf16.vlgmr.msra.gmra.mrb[20].mxu0 %vm244_vm1, %v2391_v31 }
 0x544   :  { %3947 = vmatpush3.bf16.msra.mxu0 %v4213_v10  ;;  %3950 = vmatprep.mubr.msk.bf16.mxu0 %vm4247_vm2, %v4246_v11  ;;  %v4236_v10 = vld [vmem:[%s5008_s6 + $0x78] sm:$0xff]  }
 0x545   :  { %3948 = vmatprep.subr.bf16.mxu0 %v4246_v11 }
 0x548   :  { %3949 = vmatpush3.bf16.msra.mxu0 %v4214_v53 }
 0x549   :  { %3954 = vmatprep.subr.bf16.mxu0 %v4246_v11 }
 0x54f   :  { %3951 = vmatmul.mubr.msk.bf16.vlgmr.msra.gmra.mrb[20].mxu0 %vm244_vm1, %v2701_v55 }
 0x550   :  { %3955 = vmatpush3.bf16.msra.mxu0 %v4215_v54  ;;  %3958 = vmatprep.mubr.msk.bf16.mxu0 %vm4247_vm2, %v4246_v11 }
 0x551   :  { %3956 = vmatprep.subr.bf16.mxu0 %v4246_v11 }
 0x554   :  { %3957 = vmatpush3.bf16.msra.mxu0 %v4216_v56 }
 0x555   :  { %3962 = vmatprep.subr.bf16.mxu0 %v4246_v11 }
 0x55b   :  { %3959 = vmatmul.mubr.msk.bf16.vlgmr.msra.gmra.mrb[20].mxu0 %vm244_vm1, %v2392_v8  ;;  %v4226_v8 = vld [vmem:[%s5008_s6 + $0x8] sm:$0xff]   ;;  %s4248_s6 = smov 96  }
 0x55c   :  { %3963 = vmatpush3.bf16.msra.mxu0 %v4217_v57  ;;  %3966 = vmatprep.mubr.msk.bf16.mxu0 %vm4247_vm2, %v4246_v11 }
 0x55d   :  { %3964 = vmatprep.subr.bf16.mxu0 %v4246_v11 }
 0x560   :  { %3965 = vmatpush3.bf16.msra.mxu0 %v4218_v58 }
 0x561   :  { %3970 = vmatprep.subr.bf16.mxu0 %v4246_v11 }
 0x567   :  { %3967 = vmatmul.mubr.msk.bf16.vlgmr.msra.gmra.mrb[20].mxu0 %vm244_vm1, %v2823_v60 }
 0x568   :  { %3971 = vmatpush3.bf16.msra.mxu0 %v4219_v59  ;;  %3974 = vmatprep.mubr.msk.bf16.mxu0 %vm4247_vm2, %v4246_v11 }
 0x569   :  { %3972 = vmatprep.subr.bf16.mxu0 %v4246_v11 }
 0x56c   :  { %3973 = vmatpush3.bf16.msra.mxu0 %v4220_v61 }
 0x573   :  { %3975 = vmatmul.mubr.msk.bf16.vlgmr.msra.gmra.mrb[20].mxu0 %vm244_vm1, %v2393_v62 }
 0x646   :  { %v2933_v19 = vpop.f32.mrb[20].mxu0 }
 0x647   :  { %v2940_v20 = vsel %vm122_vm0, %v2933_v19, 0.0  ;;  %v3976_v21 = vpop.f32.mrb[21].mxu0 }
 0x648   :  { %v2941_v16 = vrot.slane %v2940_v20, 4  ;;  %v2936_v22 = vpop.f32.mrb[22].mxu0 }
 0x649   :  { %v3977_v13 = vpop.f32.mrb[23].mxu0 }
 0x64a   :  { %v2942_v29 = vadd.f32 %v2941_v16, %v2940_v20 }
 0x64c   :  { %v2943_v23 = vrot.slane %v2942_v29, 2 }
 0x64e   :  { %v2944_v24 = vadd.f32 %v2943_v23, %v2942_v29 }
 0x650   :  { %v2945_v25 = vrot.slane %v2944_v24, 1 }
 0x652   :  { %v2946_v15 = vadd.f32 %v2945_v25, %v2944_v24 }
 0x654   :  { %v2948_v12 = vmul.f32 0.125, %v2946_v15 }
 0x656   :  { %v2949_v26 = vsub.f32 %v2933_v19, %v2948_v12 }
 0x658   :  { %v2950_v28 = vmul.f32 %v2949_v26, %v2949_v26 }
 0x65a   :  { %v2951_v30 = vsel %vm122_vm0, %v2950_v28, 0.0 }
 0x65b   :  { %v2952_v34 = vrot.slane %v2951_v30, 4 }
 0x65d   :  { %v2953_v17 = vadd.f32 %v2952_v34, %v2951_v30 }
 0x65f   :  { %v2954_v35 = vrot.slane %v2953_v17, 2 }
 0x661   :  { %v2955_v36 = vadd.f32 %v2954_v35, %v2953_v17 }
 0x663   :  { %v2956_v37 = vrot.slane %v2955_v36, 1 }
 0x665   :  { %v2957_v38 = vadd.f32 %v2956_v37, %v2955_v36 }
 0x667   :  { %v2958_v39 = vmul.f32 0.125, %v2957_v38 }
 0x669   :  { %v2959_v40 = vadd.f32 1e-05, %v2958_v39 }
 0x66b   :  { %4241 = vrsqrt.f32 %v2959_v40 }
 0x675   :  { %v4242_v43 = vpop.eup %4241 }
 0x676   :  { %v2961_v14 = vmul.f32 %v4242_v43, %v2949_v26 }
 0x678   :  { %v2966_v31 = vmul.f32 %v2965_v42, %v2961_v14 }
 0x67a   :  { %v2971_v33 = vadd.f32 %v2970_v3, %v2966_v31 }
 0x67c   :  { %v2972_v4 = vmax.f32 %v2971_v33, 0.0 }
 0x67e   :  { %v2973_v5 = vpack.c.bf16 %v2972_v4, %v2972_v4 }
 0x680   :  { %v2991_v7 = vrot.slane %v2973_v5, 1  ;;  %v3134_v50 = vrot.slane %v2973_v5, 2  ;;  %v3211_v53 = vrot.slane %v2973_v5, 3 }
 0x682   :  { %3987 = vmatmul.mubr.msk.bf16.vlgmr.msra.gmra.mrb[84].mxu1 %vm122_vm0, %v2991_v7 }
 0x683   :  { %3991 = vmatpush3.bf16.msra.mxu1 %v4225_v6  ;;  %3998 = vmatprep.mubr.msk.bf16.mxu1 %vm4247_vm2, %v4246_v11 }
 0x684   :  { %3992 = vmatprep.subr.bf16.mxu1 %v4246_v11 }
 0x687   :  { %3993 = vmatpush3.bf16.msra.mxu1 %v4226_v8 }
 0x688   :  { %3994 = vmatprep.subr.bf16.mxu1 %v4246_v11 }
 0x68b   :  { %3995 = vmatpush3.bf16.msra.mxu1 %v4227_v9 }
 0x68c   :  { %3996 = vmatprep.subr.bf16.mxu1 %v4246_v11 }
 0x68f   :  { %3997 = vmatpush3.bf16.msra.mxu1 %v4228_v44 }
 0x690   :  { %4002 = vmatprep.subr.bf16.mxu1 %v4246_v11 }
 0x692   :  { %3999 = vmatmul.mubr.msk.bf16.vlgmr.msra.gmra.mrb[88].mxu1 %vm122_vm0, %v2973_v5 }
 0x693   :  { %4003 = vmatpush3.bf16.msra.mxu1 %v4229_v45  ;;  %4010 = vmatprep.mubr.msk.bf16.mxu1 %vm4247_vm2, %v4246_v11 }
 0x694   :  { %4004 = vmatprep.subr.bf16.mxu1 %v4246_v11 }
 0x697   :  { %4005 = vmatpush3.bf16.msra.mxu1 %v4230_v46 }
 0x698   :  { %4006 = vmatprep.subr.bf16.mxu1 %v4246_v11 }
 0x69b   :  { %4007 = vmatpush3.bf16.msra.mxu1 %v4231_v47 }
 0x69c   :  { %4008 = vmatprep.subr.bf16.mxu1 %v4246_v11 }
 0x69f   :  { %4009 = vmatpush3.bf16.msra.mxu1 %v4232_v48 }
 0x6a0   :  { %4014 = vmatprep.subr.bf16.mxu1 %v4246_v11 }
 0x6a2   :  { %4011 = vmatmul.mubr.msk.bf16.vlgmr.msra.gmra.mrb[92].mxu1 %vm122_vm0, %v3134_v50 }
 0x6a3   :  { %4015 = vmatpush3.bf16.msra.mxu1 %v4233_v49  ;;  %4022 = vmatprep.mubr.msk.bf16.mxu1 %vm4247_vm2, %v4246_v11 }
 0x6a4   :  { %4016 = vmatprep.subr.bf16.mxu1 %v4246_v11 }
 0x6a7   :  { %4017 = vmatpush3.bf16.msra.mxu1 %v4234_v51 }
 0x6a8   :  { %4018 = vmatprep.subr.bf16.mxu1 %v4246_v11 }
 0x6ab   :  { %4019 = vmatpush3.bf16.msra.mxu1 %v4235_v52 }
 0x6ac   :  { %4020 = vmatprep.subr.bf16.mxu1 %v4246_v11  ;;  %v3282_v11 = vsub.s32 6, %v4443_v27  ;;  %v3285_v27 = vld [vmem:[%s5009_s8] sm:$0x3] }
 0x6ae   :  { %v3283_v20 = vrot.slane %v4929_v32, %v3282_v11 }
 0x6af   :  { %4021 = vmatpush3.bf16.msra.mxu1 %v4236_v10 }
 0x6b2   :  { %4023 = vmatmul.mubr.msk.bf16.vlgmr.msra.gmra.mrb[96].mxu1 %vm122_vm0, %v3211_v53 }
 0x755   :  { %v3053_v54 = vpop.f32.mrb[84].mxu1 }
 0x756   :  { %v3988_v55 = vpop.f32.mrb[85].mxu1 }
 0x757   :  { %v3056_v56 = vpop.f32.mrb[86].mxu1 }
 0x758   :  { %v3989_v57 = vpop.f32.mrb[87].mxu1 }
 0x765   :  { %v3120_v58 = vpop.f32.mrb[88].mxu1 }
 0x766   :  { %v3121_v59 = vadd.f32 %v3120_v58, %v3053_v54  ;;  %v4000_v60 = vpop.f32.mrb[89].mxu1 }
 0x767   :  { %v3123_v61 = vpop.f32.mrb[90].mxu1 }
 0x768   :  { %v4001_v62 = vpop.f32.mrb[91].mxu1 }
 0x775   :  { %v3196_v63 = vpop.f32.mrb[92].mxu1 }
 0x776   :  { %v3202_v0 = vadd.f32 %v3196_v63, %v3121_v59  ;;  %v4012_v1 = vpop.f32.mrb[93].mxu1 }
 0x777   :  { %v3199_v2 = vpop.f32.mrb[94].mxu1 }
 0x778   :  { %v4013_v19 = vpop.f32.mrb[95].mxu1 }
 0x785   :  { %v3273_v21 = vpop.f32.mrb[96].mxu1 }
 0x786   :  { %v3279_v16 = vadd.f32 %v3273_v21, %v3202_v0  ;;  %v4024_v22 = vpop.f32.mrb[97].mxu1 }
 0x787   :  { %v3276_v13 = vpop.f32.mrb[98].mxu1 }
 0x788   :  { %v3284_v29 = vadd.f32 %v3283_v20, %v3279_v16  ;;  %v4025_v23 = vpop.f32.mrb[99].mxu1 }
 0x78a   :  { %v3286_v24 = vmul.f32 0.5, %v3284_v29 }
 0x78c   :  { %v3287_v25 = vmul.f32 1.442695, %v3286_v24 }
 0x78e   :  { %4243 = vpow2.f32 %v3287_v25 }
 0x798   :  { %v4244_v15 = vpop.eup %4243 }
 0x799   :  { %3290 = vrot.lane.b32.xlu0 %v4244_v15, %s4248_s6 }
 0x79d   :  { %3298 = vrot.lane.b32.xlu0 %v3284_v29, %s4249_s21 }
 0x80b   :  { %v3291_v12 = vpop.permute.xlu0 %3290 }
 0x80c   :  { %v3293_v26 = vmul.f32 %v3291_v12, %v3285_v27 }
 0x80e   :  { %v3294_v28 = vadd.f32 %v3293_v26, %v3284_v29 }
 0x80f   :  { %v3299_v30 = vpop.permute.xlu0 %3298 }
 0x810   :  { %3296 = vst.msk [vmem:[%s5010_s9] sm:$0x3] %vm3295_vm3, %v3294_v28 }
 0x811   :  { %3302 = vst.msk [vmem:[%s5010_s9] sm:$0x3] %vm3301_vm4, %v3299_v30 }

</bundles_post_ra>
